<compile_context>
chip_gen: v7x
topology: tpu7x:2x2x1
jax: 0.10.0
libtpu: 0.0.40
codegen_flags: <defaults>
</compile_context>

<pallas_src>
import functools

import jax
import jax.numpy as jnp
from jax import lax
from jax.experimental import pallas as pl
from jax.experimental.pallas import tpu as pltpu

EPS = 1e-7        # Hyperboloid eps for float32
MIN_NORM = 1e-15
LN_EPS = 1e-5
SINH_CLAMP = 15.0  # matches torch reference's sinh/cosh clamp


def _arcosh(t):
    return jnp.log(t + jnp.sqrt(jnp.maximum(t * t - 1.0, 1e-7)))


def _round_up(x, m):
    return (x + m - 1) // m * m


def _tile_m(M, tmax):
    """Pick (padded_M, TM): TM multiple of 8 dividing padded_M, >=2 steps when possible."""
    Mp = _round_up(M, 8)
    if Mp <= tmax:
        if Mp >= 16 and Mp % 16 == 0:
            return Mp, Mp // 2          # >=2 grid steps (v7x megacore)
        return Mp, Mp
    Mp = _round_up(M, tmax)
    return Mp, tmax


def _pad_rows(x, m_pad):
    M = x.shape[0]
    if m_pad == M:
        return x
    return jnp.pad(x, ((0, m_pad - M),) + ((0, 0),) * (x.ndim - 1))


def _edge_hidden_dtype():
    """bf16 VPU/EUP exists on v6e/v7x; v5e has no bf16 VALU so keep f32 there."""
    try:
        kind = jax.devices()[0].device_kind.lower()
    except Exception:
        return jnp.bfloat16
    if "v5 lite" in kind or "v5e" in kind or "v5lite" in kind:
        return jnp.float32
    return jnp.bfloat16


# ----------------------------------------------------------------------------
# Kernel 1 (fused HGN layer): logmap0 + node linear + DenseAtt projections +
# edge attention + aggregation + hyperboloid epilogue, per block of molecules.
# ----------------------------------------------------------------------------
def _hgn_layer_kernel(h_ref, dist_ref, em_ref,
                      lw_ref, wrc_ref, b1_ref, wd_ref, w2_ref,
                      g_ref, bb_ref, b2_ref, o_ref,
                      *, c, inv_norm, hidden_dtype):
    K = 1.0 / c
    sqrtK = K ** 0.5
    TB, N, D = h_ref.shape
    M = TB * N

    # ---- Hyperboloid.logmap0 on the flattened node slab ----
    x = h_ref[...].reshape(M, D)                          # (M, D) f32 hyperboloid points
    col_r = lax.broadcasted_iota(jnp.int32, (1, D), 1)
    not_first_r = (col_r > 0).astype(jnp.float32)         # (1, D) constant vreg
    y = x * not_first_r
    y_norm = jnp.maximum(jnp.sqrt(jnp.sum(y * y, axis=-1, keepdims=True)), MIN_NORM)
    x0 = jnp.sum(x * (1.0 - not_first_r), axis=-1, keepdims=True)
    theta0 = jnp.maximum(x0 / sqrtK, 1.0 + EPS)
    lm = (sqrtK * _arcosh(theta0) / y_norm) * y           # col 0 stays 0

    # ---- node linear + fused row/col attention projections (MXU, bf16 x bf16 -> f32) ----
    ht = jnp.dot(lm.astype(jnp.bfloat16), lw_ref[...],
                 preferred_element_type=jnp.float32)      # (M, D)
    ht_b = ht.astype(jnp.bfloat16)
    prc = jnp.dot(ht_b, wrc_ref[...],
                  preferred_element_type=jnp.float32)     # (M, 2D) one 256-wide pass
    pr = (prc[:, :D] + b1_ref[...]).reshape(TB, N, D)     # DenseAtt b1 folded into row proj
    pc = prc[:, D:].reshape(TB, N, D)
    ht3 = ht_b.reshape(TB, N, D)

    # ---- DenseAtt hidden / SiLU / score / sigmoid / edge-mask ----
    dt = hidden_dtype
    wd = wd_ref[...].reshape(1, 1, 1, D).astype(dt)       # distance row of W1
    w2 = w2_ref[...].reshape(1, 1, 1, D).astype(dt)       # DenseAtt second-layer weight row
    d3 = dist_ref[...].astype(dt)[..., None]              # (TB, N, N, 1), broadcast in-kernel
    hidden = pr.astype(dt)[:, :, None, :] + pc.astype(dt)[:, None, :, :] + d3 * wd
    hidden = hidden * jax.nn.sigmoid(hidden)              # SiLU
    logit = jnp.sum((hidden * w2).astype(jnp.float32), axis=-1) + b2_ref[0]
    att = jax.nn.sigmoid(logit) * em_ref[...]             # (TB, N, N) masked attention, f32

    # ---- unsorted_segment_sum over the dense per-molecule edge set == att @ h ----
    agg = jnp.einsum('bij,bjd->bid',
                     att.astype(jnp.bfloat16), ht3,
                     preferred_element_type=jnp.float32) * inv_norm

    # ---- Epilogue: LayerNorm(out[:,1:]) -> proj_tan0 -> expmap0 (+proj)
    #      -> to_poincare -> SiLU -> PoincareBall.to_hyperboloid ----
    col = lax.broadcasted_iota(jnp.int32, (1, 1, D), 2)
    not_first = (col > 0).astype(jnp.float32)             # (1, 1, D) constant
    n = D - 1
    mean = jnp.sum(agg * not_first, axis=-1, keepdims=True) / n
    diff = (agg - mean) * not_first
    var = jnp.sum(diff * diff, axis=-1, keepdims=True) / n
    g = g_ref[...].reshape(1, 1, D)
    bb = bb_ref[...].reshape(1, 1, D)
    u = diff * lax.rsqrt(var + LN_EPS) * g + bb * not_first   # col 0 stays 0 (proj_tan0)
    unorm = jnp.maximum(jnp.sqrt(jnp.sum(u * u, axis=-1, keepdims=True)), MIN_NORM)
    theta = jnp.minimum(unorm / sqrtK, SINH_CLAMP)            # reference sinh clamp
    e = jnp.exp(theta)
    sinh_t = 0.5 * (e - 1.0 / e)                              # exact reciprocal
    rest = (sqrtK * sinh_t / unorm) * u
    y_sq = jnp.sum(rest * rest, axis=-1, keepdims=True)
    x0p = jnp.maximum(jnp.sqrt(K + y_sq), EPS)                # manifold.proj time coord
    p = sqrtK * rest / (x0p + sqrtK)                          # to_poincare
    p = p * jax.nn.sigmoid(p)                                 # act = SiLU  (silu(0)=0)
    sq = jnp.sum(p * p, axis=-1, keepdims=True)
    denom = K - sq
    first_val = sqrtK * (K + sq) / denom
    rest_val = 2.0 * K * p / denom
    o_ref[...] = jnp.where(col == 0, first_val, rest_val)


def hgn_layer_pallas(h, dist, emask, lp, c, inv_norm, hidden_dtype,
                     vmem_budget=12 << 20):
    B, N, _ = dist.shape
    D = h.shape[-1]
    h3 = h.reshape(B, N, D)

    # Rough per-molecule working set: ~3 live (N,N,D) hidden temporaries (bf16 or f32)
    # + double-buffered in/out tiles + att/agg/epilogue temps.
    hid_bytes = 2 if hidden_dtype == jnp.bfloat16 else 4
    per_b = 3 * N * N * D * hid_bytes + 24 * N * D + 24 * N * N + 4096
    TB = int(max(1, min(B, vmem_budget // per_b)))
    if B >= 2:
        TB = min(TB, (B + 1) // 2)       # >=2 grid steps so both v7x TCs get work
    Bp = _round_up(B, TB)

    def padb(x):
        if Bp == B:
            return x
        return jnp.pad(x, ((0, Bp - B),) + ((0, 0),) * (x.ndim - 1))

    hv = padb(h3.astype(jnp.float32))
    dv = padb(dist.astype(jnp.float32))
    ev = padb(emask.astype(jnp.float32))
    g = jnp.concatenate([jnp.ones((1,), jnp.float32), lp["ln_g"]]).reshape(1, D)
    bb = jnp.concatenate([jnp.zeros((1,), jnp.float32), lp["ln_b"]]).reshape(1, D)

    spec_nd = pl.BlockSpec((TB, N, D), lambda b: (b, 0, 0))
    spec_nn = pl.BlockSpec((TB, N, N), lambda b: (b, 0, 0))

    def full(r, cc):
        return pl.BlockSpec((r, cc), lambda b: (0, 0))

    out = pl.pallas_call(
        functools.partial(_hgn_layer_kernel, c=c, inv_norm=inv_norm,
                          hidden_dtype=hidden_dtype),
        out_shape=jax.ShapeDtypeStruct((Bp, N, D), jnp.float32),
        grid=(Bp // TB,),
        in_specs=[spec_nd, spec_nn, spec_nn,
                  full(D, D), full(D, 2 * D),
                  full(1, D), full(1, D), full(1, D),
                  full(1, D), full(1, D),
                  pl.BlockSpec(memory_space=pltpu.MemorySpace.SMEM)],
        out_specs=spec_nd,
        compiler_params=pltpu.CompilerParams(
            dimension_semantics=("parallel",),
            vmem_limit_bytes=32 * 1024 * 1024),
    )(hv, dv, ev,
      lp["lin_w"].astype(jnp.bfloat16),
      lp["w_rc"].astype(jnp.bfloat16),
      lp["att_b1"].reshape(1, D).astype(jnp.float32),
      lp["w_dist"].reshape(1, D).astype(jnp.float32),
      lp["att_w2_row"].reshape(1, D).astype(jnp.float32),
      g, bb,
      lp["att_b2"].reshape(1).astype(jnp.float32))
    return out[:B].reshape(B * N, D)


# ----------------------------------------------------------------------------
# Kernel 2: fused centroid distance + node mask + output MLP (128 -> 64 -> 1)
# ----------------------------------------------------------------------------
def _centroid_out_kernel(x_ref, ct_ref, mask_ref, w1_ref, b1_ref, w2r_ref, b2_ref,
                         o_ref, *, c):
    K = 1.0 / c
    sqrtK = K ** 0.5
    x = x_ref[...]                                     # (TM, D)
    mask = mask_ref[...]                               # (TM, 1)
    # Minkowski inner product: centroid time row pre-negated host-side.
    # Kept f32: arcosh(theta) with theta ~ 1 is precision-sensitive.
    mdot = jnp.dot(x, ct_ref[...], preferred_element_type=jnp.float32)
    theta = jnp.maximum(-mdot / K, 1.0 + EPS)
    dist = sqrtK * _arcosh(theta) * mask               # (TM, Kc) masked node distances
    z = jnp.dot(dist.astype(jnp.bfloat16), w1_ref[...],
                preferred_element_type=jnp.float32) + b1_ref[...]
    z = z * jax.nn.sigmoid(z)                          # SiLU
    z = jnp.sum(z * w2r_ref[...], axis=-1, keepdims=True) + b2_ref[0]
    o_ref[...] = z * mask


def centroid_out_pallas(h, ct_neg, node_mask, w1, b1, w2_row, b2, c, tm_max=512):
    M, D = h.shape
    Kc = ct_neg.shape[1]
    H1 = w1.shape[1]
    Mp, TM = _tile_m(M, tm_max)
    hp = _pad_rows(h.astype(jnp.float32), Mp)
    mp = _pad_rows(node_mask.astype(jnp.float32), Mp)
    out = pl.pallas_call(
        functools.partial(_centroid_out_kernel, c=c),
        out_shape=jax.ShapeDtypeStruct((Mp, 1), jnp.float32),
        grid=(Mp // TM,),
        in_specs=[
            pl.BlockSpec((TM, D), lambda i: (i, 0)),
            pl.BlockSpec((D, Kc), lambda i: (0, 0)),
            pl.BlockSpec((TM, 1), lambda i: (i, 0)),
            pl.BlockSpec((Kc, H1), lambda i: (0, 0)),
            pl.BlockSpec((1, H1), lambda i: (0, 0)),
            pl.BlockSpec((1, H1), lambda i: (0, 0)),
            pl.BlockSpec(memory_space=pltpu.MemorySpace.SMEM),
        ],
        out_specs=pl.BlockSpec((TM, 1), lambda i: (i, 0)),
        compiler_params=pltpu.CompilerParams(
            dimension_semantics=("parallel",),
            vmem_limit_bytes=32 * 1024 * 1024),
    )(hp, ct_neg.astype(jnp.float32), mp,
      w1.astype(jnp.bfloat16), b1.reshape(1, H1).astype(jnp.float32),
      w2_row.reshape(1, H1).astype(jnp.float32),
      b2.reshape(1).astype(jnp.float32))
    return out[:M]


# ----------------------------------------------------------------------------
# JAX glue (parameter init, gathers, reshapes)
# ----------------------------------------------------------------------------
def hyperboloid_proj_jnp(x, c):
    K = 1.0 / c
    y = x[:, 1:]
    y_sqnorm = jnp.sum(y * y, axis=-1, keepdims=True)
    x0 = jnp.maximum(jnp.sqrt(K + y_sqnorm), EPS)
    return jnp.concatenate([x0, y], axis=-1)


def xavier_uniform(key, shape, gain):
    fan_out, fan_in = shape                            # torch Linear weight: (out, in)
    a = gain * (6.0 / (fan_in + fan_out)) ** 0.5
    return jax.random.uniform(key, shape, jnp.float32, -a, a)


def init_params(key, dim=128, num_layers=2, n_centroid=128, c=1.0):
    keys = iter(jax.random.split(key, 64))
    params = {}
    # nn.Embedding(10, dim) + manifold.init_embed (uniform(-0.01, 0.01) then proj)
    emb = jax.random.uniform(next(keys), (10, dim), jnp.float32, -0.01, 0.01)
    params["embedding"] = hyperboloid_proj_jnp(emb, c)
    layers = []
    for _ in range(num_layers):
        lin_w = xavier_uniform(next(keys), (dim, dim), 0.25).T             # (in, out)
        att_w1_t = xavier_uniform(next(keys), (dim, 2 * dim + 1), 0.25).T  # (2D+1, D)
        w_row = att_w1_t[:dim]                                             # (D, D)
        w_col = att_w1_t[dim:2 * dim]                                      # (D, D)
        w_rc = jnp.concatenate([w_row, w_col], axis=1)                     # (D, 2D) packed
        w_dist = att_w1_t[2 * dim:2 * dim + 1]                             # (1, D)
        att_b1 = jnp.zeros((dim,), jnp.float32)
        att_w2_row = xavier_uniform(next(keys), (1, dim), 0.25)            # torch (1, D)
        att_b2 = jnp.zeros((1, 1), jnp.float32)
        layers.append(dict(lin_w=lin_w, w_rc=w_rc, w_dist=w_dist,
                           att_b1=att_b1, att_w2_row=att_w2_row, att_b2=att_b2,
                           ln_g=jnp.ones((dim - 1,), jnp.float32),
                           ln_b=jnp.zeros((dim - 1,), jnp.float32)))
    params["layers"] = layers
    cent = jax.random.uniform(next(keys), (n_centroid, dim), jnp.float32, -0.01, 0.01)
    cent = hyperboloid_proj_jnp(cent, c)                                   # (Kc, D)
    ct = cent.T                                                            # (D, Kc)
    params["centroids_t_neg"] = ct.at[0].multiply(-1.0)                    # pre-negated time row
    params["co_w1"] = xavier_uniform(next(keys), (64, n_centroid), 0.25).T # (Kc, 64)
    params["co_b1"] = jnp.zeros((64,), jnp.float32)
    params["co_w2_row"] = xavier_uniform(next(keys), (1, 64), 0.25)        # (1, 64)
    params["co_b2"] = jnp.zeros((1, 1), jnp.float32)
    return params


def hgnn_forward(params, atomic_numbers, positions, node_mask, u0,
                 c=1.0, cutoff=5.0, norm_factor=100.0):
    B, N = atomic_numbers.shape
    D = params["embedding"].shape[1]

    positions = positions - positions.mean(axis=1, keepdims=True)
    edge_mask = node_mask[:, :, None] * node_mask[:, None, :]               # (B, N, N)
    ar = jnp.arange(N, dtype=jnp.float32)[None, None, :] * jnp.ones((B, N, 1), jnp.float32)
    nbh = (ar * edge_mask).astype(jnp.int32)                                # (B, N, N)

    h = params["embedding"][atomic_numbers]                                 # (B, N, D)

    # AtomDistances
    bidx = jnp.arange(B)[:, None, None]
    pos_nbh = positions[bidx, nbh]                                          # (B, N, N, 3)
    dvec = pos_nbh - positions[:, :, None, :]
    dist = jnp.sqrt(jnp.sum(dvec * dvec, axis=-1))
    dist = jnp.where(edge_mask > 0, dist, 0.0)                              # (B, N, N)

    node_mask_f = node_mask.reshape(B * N, 1)
    edge_mask_eff = (dist <= cutoff).astype(jnp.float32) * edge_mask        # HardCutoff

    h = hyperboloid_proj_jnp(h.reshape(B * N, D), c)                        # manifold.proj
    inv_norm = 1.0 / norm_factor
    hidden_dtype = _edge_hidden_dtype()

    for lp in params["layers"]:
        h = hgn_layer_pallas(h, dist, edge_mask_eff, lp, c, inv_norm, hidden_dtype)

    # CentroidDistance + centroids_out MLP + mask, fused
    z = centroid_out_pallas(h, params["centroids_t_neg"], node_mask_f,
                            params["co_w1"], params["co_b1"],
                            params["co_w2_row"], params["co_b2"], c)        # (B*N, 1)
    pred = z.reshape(B, N).sum(axis=1, keepdims=True)                       # (B, 1)

    loss = jnp.sqrt(jnp.mean((pred - u0) ** 2))
    mae = jnp.mean(jnp.abs(pred - u0))
    return loss, mae


if __name__ == "__main__":
    B, N, D = 2, 8, 128
    key = jax.random.PRNGKey(0)
    kp, kz, kr, ku = jax.random.split(key, 4)

    params = init_params(kp, dim=D, num_layers=2, n_centroid=128)

    atomic_numbers = jax.random.randint(kz, (B, N), 1, 10)
    node_mask = jnp.ones((B, N), jnp.float32).at[1, 6:].set(0.0)            # pad 2 atoms
    atomic_numbers = atomic_numbers * node_mask.astype(jnp.int32)
    positions = 1.5 * jax.random.normal(kr, (B, N, 3), jnp.float32)
    u0 = jax.random.normal(ku, (B, 1), jnp.float32)

    fwd = jax.jit(hgnn_forward)
    loss, mae = fwd(params, atomic_numbers, positions, node_mask, u0)
    jax.block_until_ready((loss, mae))
    assert jnp.isfinite(loss) and jnp.isfinite(mae)
    print("KERNEL_OK")
</pallas_src>

<mosaic_0001>
module attributes {stable_mosaic.version = 11 : i64} {
  func.func @_hgn_layer_kernel(%arg0: i32, %arg1: memref<1x8x128xf32, #tpu.memory_space<vmem>>, %arg2: memref<1x8x8xf32, #tpu.memory_space<vmem>>, %arg3: memref<1x8x8xf32, #tpu.memory_space<vmem>>, %arg4: memref<128x128xbf16, #tpu.memory_space<vmem>>, %arg5: memref<128x256xbf16, #tpu.memory_space<vmem>>, %arg6: memref<1x128xf32, #tpu.memory_space<vmem>>, %arg7: memref<1x128xf32, #tpu.memory_space<vmem>>, %arg8: memref<1x128xf32, #tpu.memory_space<vmem>>, %arg9: memref<1x128xf32, #tpu.memory_space<vmem>>, %arg10: memref<1x128xf32, #tpu.memory_space<vmem>>, %arg11: memref<1xf32, #tpu.memory_space<smem>>, %arg12: memref<1x8x128xf32, #tpu.memory_space<vmem>>) attributes {dimension_semantics = [#tpu.dimension_semantics<parallel>], iteration_bounds = array<i64: 2>, scalar_prefetch = 0 : i64, scratch_operands = 0 : i64, tpu.core_type = #tpu.core_type<tc>, window_params = [{transform_indices = @transform_0, window_bounds = array<i64: 1, 8, 128>}, {transform_indices = @transform_1, window_bounds = array<i64: 1, 8, 8>}, {transform_indices = @transform_2, window_bounds = array<i64: 1, 8, 8>}, {pipeline_mode = #tpu.pipeline_mode<synchronous>, transform_indices = @transform_3, window_bounds = array<i64: 128, 128>}, {pipeline_mode = #tpu.pipeline_mode<synchronous>, transform_indices = @transform_4, window_bounds = array<i64: 128, 256>}, {pipeline_mode = #tpu.pipeline_mode<synchronous>, transform_indices = @transform_5, window_bounds = array<i64: 1, 128>}, {pipeline_mode = #tpu.pipeline_mode<synchronous>, transform_indices = @transform_6, window_bounds = array<i64: 1, 128>}, {pipeline_mode = #tpu.pipeline_mode<synchronous>, transform_indices = @transform_7, window_bounds = array<i64: 1, 128>}, {pipeline_mode = #tpu.pipeline_mode<synchronous>, transform_indices = @transform_8, window_bounds = array<i64: 1, 128>}, {pipeline_mode = #tpu.pipeline_mode<synchronous>, transform_indices = @transform_9, window_bounds = array<i64: 1, 128>}, {transform_indices = @transform_10, window_bounds = array<i64: 1>}, {transform_indices = @transform_11, window_bounds = array<i64: 1, 8, 128>}]} {
    %c0 = arith.constant 0 : index
    %c0_0 = arith.constant 0 : index
    %c0_1 = arith.constant 0 : index
    %0 = vector.load %arg1[%c0, %c0_0, %c0_1] : memref<1x8x128xf32, #tpu.memory_space<vmem>>, vector<1x8x128xf32>
    %1 = vector.shape_cast %0 : vector<1x8x128xf32> to vector<8x128xf32>
    %2 = tpu.iota {dimensions = array<i32: 1>} : vector<1x128xi32>
    %c0_i32 = arith.constant 0 : i32
    %3 = vector.broadcast %c0_i32 : i32 to vector<1x128xi32>
    %4 = arith.cmpi sgt, %2, %3 : vector<1x128xi32>
    %5 = arith.extui %4 : vector<1x128xi1> to vector<1x128xi32>
    %6 = arith.sitofp %5 : vector<1x128xi32> to vector<1x128xf32>
    %7 = vector.broadcast %6 : vector<1x128xf32> to vector<8x128xf32>
    %8 = arith.mulf %1, %7 : vector<8x128xf32>
    %9 = arith.mulf %8, %8 : vector<8x128xf32>
    %cst = arith.constant dense<0.000000e+00> : vector<8xf32>
    %10 = vector.multi_reduction <add>, %9, %cst [1] : vector<8x128xf32> to vector<8xf32>
    %11 = vector.shape_cast %10 : vector<8xf32> to vector<8x1xf32>
    %12 = math.sqrt %11 : vector<8x1xf32>
    %cst_2 = arith.constant 1.000000e-15 : f32
    %13 = vector.broadcast %cst_2 : f32 to vector<8x1xf32>
    %14 = arith.maximumf %12, %13 : vector<8x1xf32>
    %cst_3 = arith.constant 1.000000e+00 : f32
    %15 = vector.broadcast %cst_3 : f32 to vector<1x128xf32>
    %16 = arith.subf %15, %6 : vector<1x128xf32>
    %17 = vector.broadcast %16 : vector<1x128xf32> to vector<8x128xf32>
    %18 = arith.mulf %1, %17 : vector<8x128xf32>
    %cst_4 = arith.constant dense<0.000000e+00> : vector<8xf32>
    %19 = vector.multi_reduction <add>, %18, %cst_4 [1] : vector<8x128xf32> to vector<8xf32>
    %20 = vector.shape_cast %19 : vector<8xf32> to vector<8x1xf32>
    %cst_5 = arith.constant 1.000000e+00 : f32
    %21 = vector.broadcast %cst_5 : f32 to vector<8x1xf32>
    %22 = arith.divf %20, %21 : vector<8x1xf32>
    %cst_6 = arith.constant 1.00000012 : f32
    %23 = vector.broadcast %cst_6 : f32 to vector<8x1xf32>
    %24 = arith.maximumf %22, %23 : vector<8x1xf32>
    %25 = arith.mulf %24, %24 : vector<8x1xf32>
    %cst_7 = arith.constant 1.000000e+00 : f32
    %26 = vector.broadcast %cst_7 : f32 to vector<8x1xf32>
    %27 = arith.subf %25, %26 : vector<8x1xf32>
    %cst_8 = arith.constant 1.000000e-07 : f32
    %28 = vector.broadcast %cst_8 : f32 to vector<8x1xf32>
    %29 = arith.maximumf %27, %28 : vector<8x1xf32>
    %30 = math.sqrt %29 : vector<8x1xf32>
    %31 = arith.addf %24, %30 : vector<8x1xf32>
    %32 = math.log %31 : vector<8x1xf32>
    %cst_9 = arith.constant 1.000000e+00 : f32
    %33 = vector.broadcast %cst_9 : f32 to vector<8x1xf32>
    %34 = arith.mulf %33, %32 : vector<8x1xf32>
    %35 = arith.divf %34, %14 : vector<8x1xf32>
    %36 = vector.broadcast %35 : vector<8x1xf32> to vector<8x128xf32>
    %37 = arith.mulf %36, %8 : vector<8x128xf32>
    %38 = arith.truncf %37 : vector<8x128xf32> to vector<8x128xbf16>
    %c0_10 = arith.constant 0 : index
    %c0_11 = arith.constant 0 : index
    %39 = vector.load %arg4[%c0_10, %c0_11] : memref<128x128xbf16, #tpu.memory_space<vmem>>, vector<128x128xbf16>
    %cst_12 = arith.constant dense<0.000000e+00> : vector<8x128xf32>
    %40 = tpu.matmul %38, %39, %cst_12 {dimension_numbers = #tpu.dot_dimension_numbers<[1], [0], [0], [1], [0, 0, 1, 1], [], []>} : vector<8x128xbf16>, vector<128x128xbf16>, vector<8x128xf32> -> vector<8x128xf32>
    %41 = arith.truncf %40 : vector<8x128xf32> to vector<8x128xbf16>
    %c0_13 = arith.constant 0 : index
    %c0_14 = arith.constant 0 : index
    %42 = vector.load %arg5[%c0_13, %c0_14] : memref<128x256xbf16, #tpu.memory_space<vmem>>, vector<128x256xbf16>
    %cst_15 = arith.constant dense<0.000000e+00> : vector<8x256xf32>
    %43 = tpu.matmul %41, %42, %cst_15 {dimension_numbers = #tpu.dot_dimension_numbers<[1], [0], [0], [1], [0, 0, 1, 1], [], []>} : vector<8x128xbf16>, vector<128x256xbf16>, vector<8x256xf32> -> vector<8x256xf32>
    %44 = vector.extract_strided_slice %43 {offsets = [0, 0], sizes = [8, 128], strides = [1, 1]} : vector<8x256xf32> to vector<8x128xf32>
    %c0_16 = arith.constant 0 : index
    %c0_17 = arith.constant 0 : index
    %45 = vector.load %arg6[%c0_16, %c0_17] : memref<1x128xf32, #tpu.memory_space<vmem>>, vector<1x128xf32>
    %46 = vector.broadcast %45 : vector<1x128xf32> to vector<8x128xf32>
    %47 = arith.addf %44, %46 : vector<8x128xf32>
    %48 = vector.shape_cast %47 : vector<8x128xf32> to vector<1x8x128xf32>
    %49 = vector.extract_strided_slice %43 {offsets = [0, 128], sizes = [8, 128], strides = [1, 1]} : vector<8x256xf32> to vector<8x128xf32>
    %50 = vector.shape_cast %49 : vector<8x128xf32> to vector<1x8x128xf32>
    %51 = vector.shape_cast %41 : vector<8x128xbf16> to vector<1x8x128xbf16>
    %c0_18 = arith.constant 0 : index
    %c0_19 = arith.constant 0 : index
    %52 = vector.load %arg7[%c0_18, %c0_19] : memref<1x128xf32, #tpu.memory_space<vmem>>, vector<1x128xf32>
    %53 = vector.shape_cast %52 : vector<1x128xf32> to vector<1x1x1x128xf32>
    %54 = arith.truncf %53 : vector<1x1x1x128xf32> to vector<1x1x1x128xbf16>
    %c0_20 = arith.constant 0 : index
    %c0_21 = arith.constant 0 : index
    %55 = vector.load %arg8[%c0_20, %c0_21] : memref<1x128xf32, #tpu.memory_space<vmem>>, vector<1x128xf32>
    %56 = vector.shape_cast %55 : vector<1x128xf32> to vector<1x1x1x128xf32>
    %57 = arith.truncf %56 : vector<1x1x1x128xf32> to vector<1x1x1x128xbf16>
    %c0_22 = arith.constant 0 : index
    %c0_23 = arith.constant 0 : index
    %c0_24 = arith.constant 0 : index
    %58 = vector.load %arg2[%c0_22, %c0_23, %c0_24] : memref<1x8x8xf32, #tpu.memory_space<vmem>>, vector<1x8x8xf32>
    %59 = arith.truncf %58 : vector<1x8x8xf32> to vector<1x8x8xbf16>
    %60 = vector.shape_cast %59 : vector<1x8x8xbf16> to vector<1x8x8x1xbf16>
    %61 = arith.truncf %48 : vector<1x8x128xf32> to vector<1x8x128xbf16>
    %62 = vector.shape_cast %61 : vector<1x8x128xbf16> to vector<1x8x1x128xbf16>
    %63 = arith.truncf %50 : vector<1x8x128xf32> to vector<1x8x128xbf16>
    %64 = vector.shape_cast %63 : vector<1x8x128xbf16> to vector<1x1x8x128xbf16>
    %65 = vector.broadcast %62 : vector<1x8x1x128xbf16> to vector<1x8x8x128xbf16>
    %66 = vector.broadcast %64 : vector<1x1x8x128xbf16> to vector<1x8x8x128xbf16>
    %67 = arith.addf %65, %66 : vector<1x8x8x128xbf16>
    %68 = vector.broadcast %60 : vector<1x8x8x1xbf16> to vector<1x8x8x128xbf16>
    %69 = vector.broadcast %54 : vector<1x1x1x128xbf16> to vector<1x8x8x128xbf16>
    %70 = arith.mulf %68, %69 : vector<1x8x8x128xbf16>
    %71 = arith.addf %67, %70 : vector<1x8x8x128xbf16>
    %72 = arith.negf %71 : vector<1x8x8x128xbf16>
    %73 = math.exp %72 : vector<1x8x8x128xbf16>
    %cst_25 = arith.constant 1.000000e+00 : bf16
    %74 = vector.broadcast %cst_25 : bf16 to vector<1x8x8x128xbf16>
    %75 = arith.addf %74, %73 : vector<1x8x8x128xbf16>
    %76 = arith.divf %74, %75 : vector<1x8x8x128xbf16>
    %77 = arith.mulf %71, %76 : vector<1x8x8x128xbf16>
    %78 = vector.broadcast %57 : vector<1x1x1x128xbf16> to vector<1x8x8x128xbf16>
    %79 = arith.mulf %77, %78 : vector<1x8x8x128xbf16>
    %80 = arith.extf %79 : vector<1x8x8x128xbf16> to vector<1x8x8x128xf32>
    %cst_26 = arith.constant dense<0.000000e+00> : vector<1x8x8xf32>
    %81 = vector.multi_reduction <add>, %80, %cst_26 [3] : vector<1x8x8x128xf32> to vector<1x8x8xf32>
    %c0_27 = arith.constant 0 : index
    %82 = memref.load %arg11[%c0_27] : memref<1xf32, #tpu.memory_space<smem>>
    %83 = vector.broadcast %82 : f32 to vector<1x8x8xf32>
    %84 = arith.addf %81, %83 : vector<1x8x8xf32>
    %85 = arith.negf %84 : vector<1x8x8xf32>
    %86 = math.exp %85 : vector<1x8x8xf32>
    %cst_28 = arith.constant 1.000000e+00 : f32
    %87 = vector.broadcast %cst_28 : f32 to vector<1x8x8xf32>
    %88 = arith.addf %87, %86 : vector<1x8x8xf32>
    %89 = arith.divf %87, %88 : vector<1x8x8xf32>
    %c0_29 = arith.constant 0 : index
    %c0_30 = arith.constant 0 : index
    %c0_31 = arith.constant 0 : index
    %90 = vector.load %arg3[%c0_29, %c0_30, %c0_31] : memref<1x8x8xf32, #tpu.memory_space<vmem>>, vector<1x8x8xf32>
    %91 = arith.mulf %89, %90 : vector<1x8x8xf32>
    %92 = arith.truncf %91 : vector<1x8x8xf32> to vector<1x8x8xbf16>
    "tpu.trace_start"() <{level = 10 : i32, message = "bij,bjd->bid"}> : () -> ()
    %cst_32 = arith.constant dense<0.000000e+00> : vector<1x8x128xf32>
    %93 = tpu.matmul %92, %51, %cst_32 {dimension_numbers = #tpu.dot_dimension_numbers<[2], [1], [1], [2], [0, 0, 0, 1, 1, 2], [0], [0]>} : vector<1x8x8xbf16>, vector<1x8x128xbf16>, vector<1x8x128xf32> -> vector<1x8x128xf32>
    "tpu.trace_stop"() : () -> ()
    %cst_33 = arith.constant 0.00999999977 : f32
    %94 = vector.broadcast %cst_33 : f32 to vector<1x8x128xf32>
    %95 = arith.mulf %93, %94 : vector<1x8x128xf32>
    %96 = tpu.iota {dimensions = array<i32: 2>} : vector<1x1x128xi32>
    %c0_i32_34 = arith.constant 0 : i32
    %97 = vector.broadcast %c0_i32_34 : i32 to vector<1x1x128xi32>
    %98 = arith.cmpi sgt, %96, %97 : vector<1x1x128xi32>
    %99 = arith.extui %98 : vector<1x1x128xi1> to vector<1x1x128xi32>
    %100 = arith.sitofp %99 : vector<1x1x128xi32> to vector<1x1x128xf32>
    %101 = vector.broadcast %100 : vector<1x1x128xf32> to vector<1x8x128xf32>
    %102 = arith.mulf %95, %101 : vector<1x8x128xf32>
    %cst_35 = arith.constant dense<0.000000e+00> : vector<1x8xf32>
    %103 = vector.multi_reduction <add>, %102, %cst_35 [2] : vector<1x8x128xf32> to vector<1x8xf32>
    %104 = vector.shape_cast %103 : vector<1x8xf32> to vector<1x8x1xf32>
    %cst_36 = arith.constant 1.270000e+02 : f32
    %105 = vector.broadcast %cst_36 : f32 to vector<1x8x1xf32>
    %106 = arith.divf %104, %105 : vector<1x8x1xf32>
    %107 = vector.broadcast %106 : vector<1x8x1xf32> to vector<1x8x128xf32>
    %108 = arith.subf %95, %107 : vector<1x8x128xf32>
    %109 = vector.broadcast %100 : vector<1x1x128xf32> to vector<1x8x128xf32>
    %110 = arith.mulf %108, %109 : vector<1x8x128xf32>
    %111 = arith.mulf %110, %110 : vector<1x8x128xf32>
    %cst_37 = arith.constant dense<0.000000e+00> : vector<1x8xf32>
    %112 = vector.multi_reduction <add>, %111, %cst_37 [2] : vector<1x8x128xf32> to vector<1x8xf32>
    %113 = vector.shape_cast %112 : vector<1x8xf32> to vector<1x8x1xf32>
    %cst_38 = arith.constant 1.270000e+02 : f32
    %114 = vector.broadcast %cst_38 : f32 to vector<1x8x1xf32>
    %115 = arith.divf %113, %114 : vector<1x8x1xf32>
    %c0_39 = arith.constant 0 : index
    %c0_40 = arith.constant 0 : index
    %116 = vector.load %arg9[%c0_39, %c0_40] : memref<1x128xf32, #tpu.memory_space<vmem>>, vector<1x128xf32>
    %117 = vector.shape_cast %116 : vector<1x128xf32> to vector<1x1x128xf32>
    %c0_41 = arith.constant 0 : index
    %c0_42 = arith.constant 0 : index
    %118 = vector.load %arg10[%c0_41, %c0_42] : memref<1x128xf32, #tpu.memory_space<vmem>>, vector<1x128xf32>
    %119 = vector.shape_cast %118 : vector<1x128xf32> to vector<1x1x128xf32>
    %cst_43 = arith.constant 9.99999974E-6 : f32
    %120 = vector.broadcast %cst_43 : f32 to vector<1x8x1xf32>
    %121 = arith.addf %115, %120 : vector<1x8x1xf32>
    %122 = math.rsqrt %121 : vector<1x8x1xf32>
    %123 = vector.broadcast %122 : vector<1x8x1xf32> to vector<1x8x128xf32>
    %124 = arith.mulf %110, %123 : vector<1x8x128xf32>
    %125 = vector.broadcast %117 : vector<1x1x128xf32> to vector<1x8x128xf32>
    %126 = arith.mulf %124, %125 : vector<1x8x128xf32>
    %127 = arith.mulf %119, %100 : vector<1x1x128xf32>
    %128 = vector.broadcast %127 : vector<1x1x128xf32> to vector<1x8x128xf32>
    %129 = arith.addf %126, %128 : vector<1x8x128xf32>
    %130 = arith.mulf %129, %129 : vector<1x8x128xf32>
    %cst_44 = arith.constant dense<0.000000e+00> : vector<1x8xf32>
    %131 = vector.multi_reduction <add>, %130, %cst_44 [2] : vector<1x8x128xf32> to vector<1x8xf32>
    %132 = vector.shape_cast %131 : vector<1x8xf32> to vector<1x8x1xf32>
    %133 = math.sqrt %132 : vector<1x8x1xf32>
    %cst_45 = arith.constant 1.000000e-15 : f32
    %134 = vector.broadcast %cst_45 : f32 to vector<1x8x1xf32>
    %135 = arith.maximumf %133, %134 : vector<1x8x1xf32>
    %cst_46 = arith.constant 1.000000e+00 : f32
    %136 = vector.broadcast %cst_46 : f32 to vector<1x8x1xf32>
    %137 = arith.divf %135, %136 : vector<1x8x1xf32>
    %cst_47 = arith.constant 1.500000e+01 : f32
    %138 = vector.broadcast %cst_47 : f32 to vector<1x8x1xf32>
    %139 = arith.minimumf %137, %138 : vector<1x8x1xf32>
    %140 = math.exp %139 : vector<1x8x1xf32>
    %cst_48 = arith.constant 1.000000e+00 : f32
    %141 = vector.broadcast %cst_48 : f32 to vector<1x8x1xf32>
    %142 = arith.divf %141, %140 : vector<1x8x1xf32>
    %143 = arith.subf %140, %142 : vector<1x8x1xf32>
    %cst_49 = arith.constant 5.000000e-01 : f32
    %144 = vector.broadcast %cst_49 : f32 to vector<1x8x1xf32>
    %145 = arith.mulf %144, %143 : vector<1x8x1xf32>
    %cst_50 = arith.constant 1.000000e+00 : f32
    %146 = vector.broadcast %cst_50 : f32 to vector<1x8x1xf32>
    %147 = arith.mulf %146, %145 : vector<1x8x1xf32>
    %148 = arith.divf %147, %135 : vector<1x8x1xf32>
    %149 = vector.broadcast %148 : vector<1x8x1xf32> to vector<1x8x128xf32>
    %150 = arith.mulf %149, %129 : vector<1x8x128xf32>
    %151 = arith.mulf %150, %150 : vector<1x8x128xf32>
    %cst_51 = arith.constant dense<0.000000e+00> : vector<1x8xf32>
    %152 = vector.multi_reduction <add>, %151, %cst_51 [2] : vector<1x8x128xf32> to vector<1x8xf32>
    %153 = vector.shape_cast %152 : vector<1x8xf32> to vector<1x8x1xf32>
    %cst_52 = arith.constant 1.000000e+00 : f32
    %154 = vector.broadcast %cst_52 : f32 to vector<1x8x1xf32>
    %155 = arith.addf %154, %153 : vector<1x8x1xf32>
    %156 = math.sqrt %155 : vector<1x8x1xf32>
    %cst_53 = arith.constant 1.000000e-07 : f32
    %157 = vector.broadcast %cst_53 : f32 to vector<1x8x1xf32>
    %158 = arith.maximumf %156, %157 : vector<1x8x1xf32>
    %cst_54 = arith.constant 1.000000e+00 : f32
    %159 = vector.broadcast %cst_54 : f32 to vector<1x8x128xf32>
    %160 = arith.mulf %159, %150 : vector<1x8x128xf32>
    %cst_55 = arith.constant 1.000000e+00 : f32
    %161 = vector.broadcast %cst_55 : f32 to vector<1x8x1xf32>
    %162 = arith.addf %158, %161 : vector<1x8x1xf32>
    %163 = vector.broadcast %162 : vector<1x8x1xf32> to vector<1x8x128xf32>
    %164 = arith.divf %160, %163 : vector<1x8x128xf32>
    %165 = arith.negf %164 : vector<1x8x128xf32>
    %166 = math.exp %165 : vector<1x8x128xf32>
    %cst_56 = arith.constant 1.000000e+00 : f32
    %167 = vector.broadcast %cst_56 : f32 to vector<1x8x128xf32>
    %168 = arith.addf %167, %166 : vector<1x8x128xf32>
    %169 = arith.divf %167, %168 : vector<1x8x128xf32>
    %170 = arith.mulf %164, %169 : vector<1x8x128xf32>
    %171 = arith.mulf %170, %170 : vector<1x8x128xf32>
    %cst_57 = arith.constant dense<0.000000e+00> : vector<1x8xf32>
    %172 = vector.multi_reduction <add>, %171, %cst_57 [2] : vector<1x8x128xf32> to vector<1x8xf32>
    %173 = vector.shape_cast %172 : vector<1x8xf32> to vector<1x8x1xf32>
    %cst_58 = arith.constant 1.000000e+00 : f32
    %174 = vector.broadcast %cst_58 : f32 to vector<1x8x1xf32>
    %175 = arith.subf %174, %173 : vector<1x8x1xf32>
    %cst_59 = arith.constant 1.000000e+00 : f32
    %176 = vector.broadcast %cst_59 : f32 to vector<1x8x1xf32>
    %177 = arith.addf %176, %173 : vector<1x8x1xf32>
    %cst_60 = arith.constant 1.000000e+00 : f32
    %178 = vector.broadcast %cst_60 : f32 to vector<1x8x1xf32>
    %179 = arith.mulf %178, %177 : vector<1x8x1xf32>
    %180 = arith.divf %179, %175 : vector<1x8x1xf32>
    %cst_61 = arith.constant 2.000000e+00 : f32
    %181 = vector.broadcast %cst_61 : f32 to vector<1x8x128xf32>
    %182 = arith.mulf %181, %170 : vector<1x8x128xf32>
    %183 = vector.broadcast %175 : vector<1x8x1xf32> to vector<1x8x128xf32>
    %184 = arith.divf %182, %183 : vector<1x8x128xf32>
    %c0_i32_62 = arith.constant 0 : i32
    %185 = vector.broadcast %c0_i32_62 : i32 to vector<1x1x128xi32>
    %186 = arith.cmpi eq, %96, %185 : vector<1x1x128xi32>
    %187 = vector.shape_cast %186 : vector<1x1x128xi1> to vector<1x1x128xi1>
    %188 = vector.broadcast %187 : vector<1x1x128xi1> to vector<1x8x128xi1>
    %189 = vector.shape_cast %180 : vector<1x8x1xf32> to vector<1x8x1xf32>
    %190 = vector.broadcast %189 : vector<1x8x1xf32> to vector<1x8x128xf32>
    %191 = arith.select %188, %190, %184 : vector<1x8x128xi1>, vector<1x8x128xf32>
    %c0_63 = arith.constant 0 : index
    %c0_64 = arith.constant 0 : index
    %c0_65 = arith.constant 0 : index
    %192 = vector.load %arg12[%c0_63, %c0_64, %c0_65] : memref<1x8x128xf32, #tpu.memory_space<vmem>>, vector<1x8x128xf32>
    tpu.vector_store %arg12[%c0_63, %c0_64, %c0_65], %191 {strides = array<i32>} : memref<1x8x128xf32, #tpu.memory_space<vmem>>, vector<1x8x128xf32>,
    return
  }
  func.func @transform_0(%arg0: i32) -> (i32, i32, i32) {
    %c0_i32 = arith.constant 0 : i32
    %c0_i32_0 = arith.constant 0 : i32
    %c0_i32_1 = arith.constant 0 : i32
    return %arg0, %c0_i32, %c0_i32_0 : i32, i32, i32
  }
  func.func @transform_1(%arg0: i32) -> (i32, i32, i32) {
    %c0_i32 = arith.constant 0 : i32
    %c0_i32_0 = arith.constant 0 : i32
    %c0_i32_1 = arith.constant 0 : i32
    return %arg0, %c0_i32, %c0_i32_0 : i32, i32, i32
  }
  func.func @transform_2(%arg0: i32) -> (i32, i32, i32) {
    %c0_i32 = arith.constant 0 : i32
    %c0_i32_0 = arith.constant 0 : i32
    %c0_i32_1 = arith.constant 0 : i32
    return %arg0, %c0_i32, %c0_i32_0 : i32, i32, i32
  }
  func.func @transform_3(%arg0: i32) -> (i32, i32) {
    %c0_i32 = arith.constant 0 : i32
    %c0_i32_0 = arith.constant 0 : i32
    %c0_i32_1 = arith.constant 0 : i32
    return %c0_i32, %c0_i32_0 : i32, i32
  }
  func.func @transform_4(%arg0: i32) -> (i32, i32) {
    %c0_i32 = arith.constant 0 : i32
    %c0_i32_0 = arith.constant 0 : i32
    %c0_i32_1 = arith.constant 0 : i32
    return %c0_i32, %c0_i32_0 : i32, i32
  }
  func.func @transform_5(%arg0: i32) -> (i32, i32) {
    %c0_i32 = arith.constant 0 : i32
    %c0_i32_0 = arith.constant 0 : i32
    %c0_i32_1 = arith.constant 0 : i32
    return %c0_i32, %c0_i32_0 : i32, i32
  }
  func.func @transform_6(%arg0: i32) -> (i32, i32) {
    %c0_i32 = arith.constant 0 : i32
    %c0_i32_0 = arith.constant 0 : i32
    %c0_i32_1 = arith.constant 0 : i32
    return %c0_i32, %c0_i32_0 : i32, i32
  }
  func.func @transform_7(%arg0: i32) -> (i32, i32) {
    %c0_i32 = arith.constant 0 : i32
    %c0_i32_0 = arith.constant 0 : i32
    %c0_i32_1 = arith.constant 0 : i32
    return %c0_i32, %c0_i32_0 : i32, i32
  }
  func.func @transform_8(%arg0: i32) -> (i32, i32) {
    %c0_i32 = arith.constant 0 : i32
    %c0_i32_0 = arith.constant 0 : i32
    %c0_i32_1 = arith.constant 0 : i32
    return %c0_i32, %c0_i32_0 : i32, i32
  }
  func.func @transform_9(%arg0: i32) -> (i32, i32) {
    %c0_i32 = arith.constant 0 : i32
    %c0_i32_0 = arith.constant 0 : i32
    %c0_i32_1 = arith.constant 0 : i32
    return %c0_i32, %c0_i32_0 : i32, i32
  }
  func.func @transform_10(%arg0: i32) -> i32 {
    %c0_i32 = arith.constant 0 : i32
    %c0_i32_0 = arith.constant 0 : i32
    return %c0_i32 : i32
  }
  func.func @transform_11(%arg0: i32) -> (i32, i32, i32) {
    %c0_i32 = arith.constant 0 : i32
    %c0_i32_0 = arith.constant 0 : i32
    %c0_i32_1 = arith.constant 0 : i32
    return %arg0, %c0_i32, %c0_i32_0 : i32, i32, i32
  }
}

module attributes {stable_mosaic.version = 11 : i64} {
  func.func @_centroid_out_kernel(%arg0: i32, %arg1: memref<8x128xf32, #tpu.memory_space<vmem>>, %arg2: memref<128x128xf32, #tpu.memory_space<vmem>>, %arg3: memref<8x1xf32, #tpu.memory_space<vmem>>, %arg4: memref<128x64xbf16, #tpu.memory_space<vmem>>, %arg5: memref<1x64xf32, #tpu.memory_space<vmem>>, %arg6: memref<1x64xf32, #tpu.memory_space<vmem>>, %arg7: memref<1xf32, #tpu.memory_space<smem>>, %arg8: memref<8x1xf32, #tpu.memory_space<vmem>>) attributes {dimension_semantics = [#tpu.dimension_semantics<parallel>], iteration_bounds = array<i64: 2>, scalar_prefetch = 0 : i64, scratch_operands = 0 : i64, tpu.core_type = #tpu.core_type<tc>, window_params = [{transform_indices = @transform_0, window_bounds = array<i64: 8, 128>}, {pipeline_mode = #tpu.pipeline_mode<synchronous>, transform_indices = @transform_1, window_bounds = array<i64: 128, 128>}, {transform_indices = @transform_2, window_bounds = array<i64: 8, 1>}, {pipeline_mode = #tpu.pipeline_mode<synchronous>, transform_indices = @transform_3, window_bounds = array<i64: 128, 64>}, {pipeline_mode = #tpu.pipeline_mode<synchronous>, transform_indices = @transform_4, window_bounds = array<i64: 1, 64>}, {pipeline_mode = #tpu.pipeline_mode<synchronous>, transform_indices = @transform_5, window_bounds = array<i64: 1, 64>}, {transform_indices = @transform_6, window_bounds = array<i64: 1>}, {transform_indices = @transform_7, window_bounds = array<i64: 8, 1>}]} {
    %c0 = arith.constant 0 : index
    %c0_0 = arith.constant 0 : index
    %0 = vector.load %arg1[%c0, %c0_0] : memref<8x128xf32, #tpu.memory_space<vmem>>, vector<8x128xf32>
    %c0_1 = arith.constant 0 : index
    %c0_2 = arith.constant 0 : index
    %1 = vector.load %arg3[%c0_1, %c0_2] : memref<8x1xf32, #tpu.memory_space<vmem>>, vector<8x1xf32>
    %c0_3 = arith.constant 0 : index
    %c0_4 = arith.constant 0 : index
    %2 = vector.load %arg2[%c0_3, %c0_4] : memref<128x128xf32, #tpu.memory_space<vmem>>, vector<128x128xf32>
    %cst = arith.constant dense<0.000000e+00> : vector<8x128xf32>
    %3 = tpu.matmul %0, %2, %cst {dimension_numbers = #tpu.dot_dimension_numbers<[1], [0], [0], [1], [0, 0, 1, 1], [], []>} : vector<8x128xf32>, vector<128x128xf32>, vector<8x128xf32> -> vector<8x128xf32>
    %cst_5 = arith.constant 0.000000e+00 : f32
    %4 = vector.broadcast %cst_5 : f32 to vector<8x128xf32>
    %5 = arith.subf %4, %3 : vector<8x128xf32>
    %cst_6 = arith.constant 1.000000e+00 : f32
    %6 = vector.broadcast %cst_6 : f32 to vector<8x128xf32>
    %7 = arith.divf %5, %6 : vector<8x128xf32>
    %cst_7 = arith.constant 1.00000012 : f32
    %8 = vector.broadcast %cst_7 : f32 to vector<8x128xf32>
    %9 = arith.maximumf %7, %8 : vector<8x128xf32>
    %10 = arith.mulf %9, %9 : vector<8x128xf32>
    %cst_8 = arith.constant 1.000000e+00 : f32
    %11 = vector.broadcast %cst_8 : f32 to vector<8x128xf32>
    %12 = arith.subf %10, %11 : vector<8x128xf32>
    %cst_9 = arith.constant 1.000000e-07 : f32
    %13 = vector.broadcast %cst_9 : f32 to vector<8x128xf32>
    %14 = arith.maximumf %12, %13 : vector<8x128xf32>
    %15 = math.sqrt %14 : vector<8x128xf32>
    %16 = arith.addf %9, %15 : vector<8x128xf32>
    %17 = math.log %16 : vector<8x128xf32>
    %cst_10 = arith.constant 1.000000e+00 : f32
    %18 = vector.broadcast %cst_10 : f32 to vector<8x128xf32>
    %19 = arith.mulf %18, %17 : vector<8x128xf32>
    %20 = vector.broadcast %1 : vector<8x1xf32> to vector<8x128xf32>
    %21 = arith.mulf %19, %20 : vector<8x128xf32>
    %22 = arith.truncf %21 : vector<8x128xf32> to vector<8x128xbf16>
    %c0_11 = arith.constant 0 : index
    %c0_12 = arith.constant 0 : index
    %23 = vector.load %arg4[%c0_11, %c0_12] : memref<128x64xbf16, #tpu.memory_space<vmem>>, vector<128x64xbf16>
    %cst_13 = arith.constant dense<0.000000e+00> : vector<8x64xf32>
    %24 = tpu.matmul %22, %23, %cst_13 {dimension_numbers = #tpu.dot_dimension_numbers<[1], [0], [0], [1], [0, 0, 1, 1], [], []>} : vector<8x128xbf16>, vector<128x64xbf16>, vector<8x64xf32> -> vector<8x64xf32>
    %c0_14 = arith.constant 0 : index
    %c0_15 = arith.constant 0 : index
    %25 = vector.load %arg5[%c0_14, %c0_15] : memref<1x64xf32, #tpu.memory_space<vmem>>, vector<1x64xf32>
    %26 = vector.broadcast %25 : vector<1x64xf32> to vector<8x64xf32>
    %27 = arith.addf %24, %26 : vector<8x64xf32>
    %28 = arith.negf %27 : vector<8x64xf32>
    %29 = math.exp %28 : vector<8x64xf32>
    %cst_16 = arith.constant 1.000000e+00 : f32
    %30 = vector.broadcast %cst_16 : f32 to vector<8x64xf32>
    %31 = arith.addf %30, %29 : vector<8x64xf32>
    %32 = arith.divf %30, %31 : vector<8x64xf32>
    %33 = arith.mulf %27, %32 : vector<8x64xf32>
    %c0_17 = arith.constant 0 : index
    %c0_18 = arith.constant 0 : index
    %34 = vector.load %arg6[%c0_17, %c0_18] : memref<1x64xf32, #tpu.memory_space<vmem>>, vector<1x64xf32>
    %35 = vector.broadcast %34 : vector<1x64xf32> to vector<8x64xf32>
    %36 = arith.mulf %33, %35 : vector<8x64xf32>
    %cst_19 = arith.constant dense<0.000000e+00> : vector<8xf32>
    %37 = vector.multi_reduction <add>, %36, %cst_19 [1] : vector<8x64xf32> to vector<8xf32>
    %38 = vector.shape_cast %37 : vector<8xf32> to vector<8x1xf32>
    %c0_20 = arith.constant 0 : index
    %39 = memref.load %arg7[%c0_20] : memref<1xf32, #tpu.memory_space<smem>>
    %40 = vector.broadcast %39 : f32 to vector<8x1xf32>
    %41 = arith.addf %38, %40 : vector<8x1xf32>
    %42 = arith.mulf %41, %1 : vector<8x1xf32>
    %c0_21 = arith.constant 0 : index
    %c0_22 = arith.constant 0 : index
    %43 = vector.load %arg8[%c0_21, %c0_22] : memref<8x1xf32, #tpu.memory_space<vmem>>, vector<8x1xf32>
    tpu.vector_store %arg8[%c0_21, %c0_22], %42 {strides = array<i32>} : memref<8x1xf32, #tpu.memory_space<vmem>>, vector<8x1xf32>,
    return
  }
  func.func @transform_0(%arg0: i32) -> (i32, i32) {
    %c0_i32 = arith.constant 0 : i32
    %c0_i32_0 = arith.constant 0 : i32
    return %arg0, %c0_i32 : i32, i32
  }
  func.func @transform_1(%arg0: i32) -> (i32, i32) {
    %c0_i32 = arith.constant 0 : i32
    %c0_i32_0 = arith.constant 0 : i32
    %c0_i32_1 = arith.constant 0 : i32
    return %c0_i32, %c0_i32_0 : i32, i32
  }
  func.func @transform_2(%arg0: i32) -> (i32, i32) {
    %c0_i32 = arith.constant 0 : i32
    %c0_i32_0 = arith.constant 0 : i32
    return %arg0, %c0_i32 : i32, i32
  }
  func.func @transform_3(%arg0: i32) -> (i32, i32) {
    %c0_i32 = arith.constant 0 : i32
    %c0_i32_0 = arith.constant 0 : i32
    %c0_i32_1 = arith.constant 0 : i32
    return %c0_i32, %c0_i32_0 : i32, i32
  }
  func.func @transform_4(%arg0: i32) -> (i32, i32) {
    %c0_i32 = arith.constant 0 : i32
    %c0_i32_0 = arith.constant 0 : i32
    %c0_i32_1 = arith.constant 0 : i32
    return %c0_i32, %c0_i32_0 : i32, i32
  }
  func.func @transform_5(%arg0: i32) -> (i32, i32) {
    %c0_i32 = arith.constant 0 : i32
    %c0_i32_0 = arith.constant 0 : i32
    %c0_i32_1 = arith.constant 0 : i32
    return %c0_i32, %c0_i32_0 : i32, i32
  }
  func.func @transform_6(%arg0: i32) -> i32 {
    %c0_i32 = arith.constant 0 : i32
    %c0_i32_0 = arith.constant 0 : i32
    return %c0_i32 : i32
  }
  func.func @transform_7(%arg0: i32) -> (i32, i32) {
    %c0_i32 = arith.constant 0 : i32
    %c0_i32_0 = arith.constant 0 : i32
    return %arg0, %c0_i32 : i32, i32
  }
}

</mosaic_0001>

<bundles_post_ra>
// kernel: hgnn_forward.5
= control target key start
LH: loop header
LB: loop body
LE: loop exit
PB: predicated region body
PF: predicated region fallthrough
CT: control target
= control target key end

     0   :  { %s815_s26 = smov 0   ;;  %s932_s0 = inlined_call_operand.vmem [shape: f32[16,128], index: 0, kind: input, shape index: {}]   ;;  %s933_s1 = inlined_call_operand.vmem [shape: f32[128,128], index: 1, kind: input, shape index: {}]   ;;  %s934_s2 = inlined_call_operand.vmem [shape: f32[16,1], index: 2, kind: input, shape index: {}]   ;;  %s935_s3 = inlined_call_operand.vmem [shape: bf16[128,64], index: 3, kind: input, shape index: {}]   ;;  %s936_s4 = inlined_call_operand.vmem [shape: f32[1,64], index: 4, kind: input, shape index: {}]   ;;  %s937_s5 = inlined_call_operand.vmem [shape: f32[1,64], index: 5, kind: input, shape index: {}]   ;;  %s938_s6 = inlined_call_operand.<no memory space> [shape: f32[1], index: 6, kind: input, shape index: {}]   ;;  %s939_s7 = inlined_call_operand.vmem [shape: f32[16,1], index: 7, kind: output, shape index: {}]  }
   0x1   :  { %12 = sst [smem:[#allocation2]] %s938_s6 }
   0x2 LB: > { %s604_s27 = sadd.s32 4294967295, %s766_s26   ;;  %p608_p0 = scmp.ge.s32.totalorder %s766_s26, 1  ;;  %s766_s26 = sphi %s815_s26, %s18_s26  }
   0x3   : > { %p246_p1 = scmp.lt.s32.totalorder %s766_s26, 3 }
   0x5   : > { %p247_p2 = pnand %p608_p0, %p246_p1 }
   0x6   : > { %v295_v0 = vld [vmem:[%s933_s1] sm:$0xff] (!%p247_p2)  ;;  %v296_v1 = vld [vmem:[%s933_s1 + $0x8] sm:$0xff] (!%p247_p2)  ;;  %v297_v2 = vld [vmem:[%s933_s1 + $0x10] sm:$0xff] (!%p247_p2)  ;;  %v768_v3 = vmov (!%p247_p2), 0.0|0.0   ;;  %vm769_vm0 = vmmov (!%p247_p2), 0   ;;  %v770_v6 = vmov (!%p247_p2), 0.0  }
   0x7   : > { %250 = sbr.rel (%p247_p2) target bundleno = 688 (0x2b0), region = 48  ;;  %707 = vmatprep.subr.bf16.mxu0 (!%p247_p2), %v768_v3  ;;  %v708_v4 = vpack.c.bf16 (!%p247_p2), %v296_v1, %v295_v0  ;;  %v298_v5 = vld [vmem:[%s933_s1 + $0x18] sm:$0xff] (!%p247_p2)  ;;  %684 = vmatprep.mubr.msk.f32.mxu0 (!%p247_p2), %vm769_vm0, %v770_v6  ;;  %p280_p3 = scmp.lt.s32.totalorder (!%p247_p2), %s604_s27, 1  ;;  %v771_v7 = vmov (!%p247_p2), 0   ;;  %v299_v9 = vld [vmem:[%s933_s1 + $0x20] sm:$0xff] (!%p247_p2)  ;;  %v300_v10 = vld [vmem:[%s933_s1 + $0x28] sm:$0xff] (!%p247_p2) }
   0x8   : > { %743 = vset.pattern.permute.xlu0 (!%p247_p2), %v771_v7  ;;  %687 = vmatprep.subr.bf16.mxu1 (!%p247_p2), %v770_v6  ;;  %v711_v8 = vpack.c.bf16 (!%p247_p2), %v298_v5, %v297_v2  ;;  %v301_v11 = vld [vmem:[%s933_s1 + $0x30] sm:$0xff] (!%p247_p2)  ;;  %v714_v12 = vpack.c.bf16 (!%p247_p2), %v300_v10, %v299_v9  ;;  %v302_v13 = vld [vmem:[%s933_s1 + $0x38] sm:$0xff] (!%p247_p2)  ;;  %v303_v16 = vld [vmem:[%s933_s1 + $0x40] sm:$0xff] (!%p247_p2)  ;;  %vm529_vm3 = vcmask (!%p247_p2), 523264   ;;  %s533_s19 = sld [smem:[#allocation2]] (!%p247_p2)  ;;  %vm537_vm4 = vcmask (!%p247_p2), 7168  }
   0x9   : > { %709 = vmatpush3.bf16.msra.mxu0 (!%p247_p2), %v708_v4  ;;  %703 = vmatprep.mubr.msk.bf16.mxu1 (!%p247_p2), %vm769_vm0, %v770_v6  ;;  %v717_v15 = vpack.c.bf16 (!%p247_p2), %v302_v13, %v301_v11  ;;  %v304_v17 = vld [vmem:[%s933_s1 + $0x48] sm:$0xff] (!%p247_p2)  ;;  %v305_v19 = vld [vmem:[%s933_s1 + $0x50] sm:$0xff] (!%p247_p2)  ;;  %v306_v20 = vld [vmem:[%s933_s1 + $0x58] sm:$0xff] (!%p247_p2) }
   0xa   : > { %710 = vmatprep.subr.bf16.mxu0 (!%p247_p2), %v768_v3  ;;  %v720_v18 = vpack.c.bf16 (!%p247_p2), %v304_v17, %v303_v16  ;;  %v723_v21 = vpack.c.bf16 (!%p247_p2), %v306_v20, %v305_v19  ;;  %v307_v22 = vld [vmem:[%s933_s1 + $0x60] sm:$0xff] (!%p247_p2)  ;;  %v308_v23 = vld [vmem:[%s933_s1 + $0x68] sm:$0xff] (!%p247_p2)  ;;  %v309_v25 = vld [vmem:[%s933_s1 + $0x70] sm:$0xff] (!%p247_p2) }
   0xb   : > { %v726_v24 = vpack.c.bf16 (!%p247_p2), %v308_v23, %v307_v22  ;;  %v310_v26 = vld [vmem:[%s933_s1 + $0x78] sm:$0xff] (!%p247_p2)  ;;  %v744_v29 = vld [vmem:[%s935_s3] sm:$0xff] (!%p247_p2)   ;;  %v745_v30 = vld [vmem:[%s935_s3 + $0x8] sm:$0xff] (!%p247_p2)  }
   0xc   : > { %v729_v27 = vpack.c.bf16 (!%p247_p2), %v310_v26, %v309_v25  ;;  %688 = vmatpush3.bf16.msra.mxu1 (!%p247_p2), %v744_v29  ;;  %v746_v31 = vld [vmem:[%s935_s3 + $0x10] sm:$0xff] (!%p247_p2)   ;;  %v747_v32 = vld [vmem:[%s935_s3 + $0x18] sm:$0xff] (!%p247_p2)   ;;  %v748_v33 = vld [vmem:[%s935_s3 + $0x20] sm:$0xff] (!%p247_p2)  }
   0xd   : > { %712 = vmatpush3.bf16.msra.mxu0 (!%p247_p2), %v711_v8  ;;  %689 = vmatprep.subr.bf16.mxu1 (!%p247_p2), %v770_v6  ;;  %v749_v34 = vld [vmem:[%s935_s3 + $0x28] sm:$0xff] (!%p247_p2)   ;;  %v750_v35 = vld [vmem:[%s935_s3 + $0x30] sm:$0xff] (!%p247_p2)   ;;  %v751_v36 = vld [vmem:[%s935_s3 + $0x38] sm:$0xff] (!%p247_p2)  }
   0xe   : > { %s941_s27 = smov (!%p280_p3, %s604_s27), 1  ;;  %713 = vmatprep.subr.bf16.mxu0 %v768_v3  ;;  %v613_v55 = vld [vmem:[%s936_s4] ss:$0 sm:$0xff]  ;;  %v534_v5 = vstv %s533_s19 }
   0xf   : > { %s844_s16 = sshll.u32 %s941_s27, 3  ;;  %v623_v1 = vld [vmem:[%s937_s5] ss:$0 sm:$0xff] }
  0x10   : > { %s287_s23 = scalar_lea.vmem %s934_s2, %s844_s16  ;;  %s283_s20 = scalar_lea.vmem %s932_s0, %s844_s16  ;;  %690 = vmatpush3.bf16.msra.mxu1 %v745_v30 }
  0x11   : > { %v856_v14 = vld [vmem:[%s287_s23] sm:$0xff]  ;;  %715 = vmatpush3.bf16.msra.mxu0 %v714_v12  ;;  %691 = vmatprep.subr.bf16.mxu1 %v770_v6  ;;  %s291_s22 = scalar_lea.vmem %s939_s7, %s844_s16 }
  0x12   : > { %398 = vperm.xlu0 %743, %v856_v14   ;;  %716 = vmatprep.subr.bf16.mxu0 %v768_v3  ;;  %v293_v28 = vld [vmem:[%s283_s20] sm:$0xff] }
  0x14   : > { %692 = vmatpush3.bf16.msra.mxu1 %v746_v31 }
  0x15   : > { %718 = vmatpush3.bf16.msra.mxu0 %v717_v15  ;;  %693 = vmatprep.subr.bf16.mxu1 %v770_v6 }
  0x16   : > { %719 = vmatprep.subr.bf16.mxu0 %v768_v3 }
  0x18   : > { %694 = vmatpush3.bf16.msra.mxu1 %v747_v32 }
  0x19   : > { %721 = vmatpush3.bf16.msra.mxu0 %v720_v18  ;;  %695 = vmatprep.subr.bf16.mxu1 %v770_v6 }
  0x1a   : > { %722 = vmatprep.subr.bf16.mxu0 %v768_v3 }
  0x1c   : > { %696 = vmatpush3.bf16.msra.mxu1 %v748_v33 }
  0x1d   : > { %724 = vmatpush3.bf16.msra.mxu0 %v723_v21  ;;  %697 = vmatprep.subr.bf16.mxu1 %v770_v6 }
  0x1e   : > { %725 = vmatprep.subr.bf16.mxu0 %v768_v3 }
  0x20   : > { %698 = vmatpush3.bf16.msra.mxu1 %v749_v34 }
  0x21   : > { %727 = vmatpush3.bf16.msra.mxu0 %v726_v24  ;;  %699 = vmatprep.subr.bf16.mxu1 %v770_v6 }
  0x22   : > { %728 = vmatprep.subr.bf16.mxu0 %v768_v3 }
  0x24   : > { %700 = vmatpush3.bf16.msra.mxu1 %v750_v35 }
  0x25   : > { %730 = vmatpush3.bf16.msra.mxu0 %v729_v27  ;;  %701 = vmatprep.subr.bf16.mxu1 %v770_v6 }
  0x28   : > { %685 = vmatmul.mubr.f32.vlgmr.msra.gmra.mrb[0].mxu0 %v293_v28  ;;  %702 = vmatpush3.bf16.msra.mxu1 %v751_v36 }
  0x91   : > { %v399_v51 = vpop.permute.xlu0 %398 }
  0xfb   : > { %v377_v37 = vpop.f32.mrb[0].mxu0 }
  0xfc   : > { %v381_v38 = vsub.f32 0.0, %v377_v37  ;;  %v686_v39 = vpop.f32.mrb[1].mxu0 }
  0xfe   : > { %v382_v40 = vmax.f32 %v381_v38, 1.0000001 }
 0x100   : > { %v383_v41 = vmul.f32 %v382_v40, %v382_v40 }
 0x102   : > { %v612_v42 = vadd.f32 -1.0, %v383_v41 }
 0x104   : > { %v385_v43 = vmax.f32 %v612_v42, 1e-07 }
 0x106   : > { %752 = vrsqrt.f32 %v385_v43  ;;  %vm388_vm1 = vcmp.eq.f32.partialorder %v385_v43, inf  ;;  %v391_v46 = vand.u32 2147483648, %v385_v43  ;;  %vm390_vm2 = vcmp.eq.f32.partialorder %v385_v43, 0.0 }
 0x110   : > { %v753_v44 = vpop.eup %752 }
 0x111   : > { %v387_v45 = vmul.f32 %v753_v44, %v385_v43 }
 0x113   : > { %v389_v47 = vsel %vm388_vm1, %v385_v43, %v387_v45 }
 0x114   : > { %v392_v48 = vsel %vm390_vm2, %v391_v46, %v389_v47 }
 0x115   : > { %v393_v49 = vadd.f32 %v392_v48, %v382_v40 }
 0x117   : > { %754 = vlog2.f32 %v393_v49 }
 0x121   : > { %v755_v50 = vpop.eup %754 }
 0x122   : > { %v395_v52 = vmul.f32 0.6931472, %v755_v50 }
 0x124   : > { %v401_v53 = vmul.f32 %v399_v51, %v395_v52 }
 0x126   : > { %v402_v54 = vpack.c.bf16 %v401_v53, %v401_v53 }
 0x128   : > { %704 = vmatmul.mubr.bf16.vlgmr.msra.gmra.mrb[0].mxu1 %v402_v54 }
 0x1fb   : > { %v508_v56 = vpop.f32.mrb[0].mxu1 }
 0x1fc   : > { %v509_v57 = vadd.f32 %v613_v55, %v508_v56  ;;  %v705_v58 = vpop.f32.mrb[1].mxu1 }
 0x1fd   : > { %v511_v59 = vpop.f32.mrb[2].mxu1 }
 0x1fe   : > { %v622_v60 = vmul.f32 -1.442695, %v509_v57  ;;  %v706_v61 = vpop.f32.mrb[3].mxu1 }
 0x200   : > { %756 = vpow2.f32 %v622_v60 }
 0x20a   : > { %v757_v62 = vpop.eup %756 }
 0x20b   : > { %v517_v63 = vadd.f32 1.0, %v757_v62 }
 0x20d   : > { %758 = vrcp.f32 %v517_v63 }
 0x217   : > { %v759_v0 = vpop.eup %758 }
 0x218   : > { %v520_v2 = vmul.f32 %v759_v0, %v509_v57 }
 0x21a   : > { %v528_v3 = vmul.f32 %v623_v1, %v520_v2 }
 0x21c   : > { %v530_v4 = vsel %vm529_vm3, %v528_v3, 0.0 }
 0x21d   : > { %531 = vadd.xlane.f32.xlu0 %v530_v4 }
 0x2aa   : > { %v532_v6 = vpop.xlane.xlu0 %531 }
 0x2ab   : > { %v535_v7 = vadd.f32 %v534_v5, %v532_v6 }
 0x2ad   : > { %v536_v8 = vmul.f32 %v535_v7, %v856_v14 }
 0x2af   : > { %538 = vst.msk [vmem:[%s291_s22] sm:$0xff] %vm537_vm4, %v536_v8 }
 0x2b0 PF: > { %s18_s26 = sadd.s32 1, %s766_s26  }
 0x2b1   : > { %p15_p4 = scmp.ge.s32.totalorder %s18_s26, 4  }
 0x2b3   :  { %17 = sbr.rel (!%p15_p4) target bundleno = 2 (0x2), region = 81 }

// kernel: hgnn_forward.3
= control target key start
LH: loop header
LB: loop body
LE: loop exit
PB: predicated region body
PF: predicated region fallthrough
CT: control target
= control target key end

     0   :  { %s1794_s19 = smov 0   ;;  %s2067_s0 = inlined_call_operand.vmem [shape: f32[2,8,128], index: 0, kind: input, shape index: {}]   ;;  %s2068_s1 = inlined_call_operand.vmem [shape: f32[2,8,8], index: 1, kind: input, shape index: {}]   ;;  %s2069_s2 = inlined_call_operand.vmem [shape: f32[2,8,8], index: 2, kind: input, shape index: {}]   ;;  %s2070_s3 = inlined_call_operand.vmem [shape: bf16[128,128], index: 3, kind: input, shape index: {}]   ;;  %s2071_s4 = inlined_call_operand.vmem [shape: bf16[128,256], index: 4, kind: input, shape index: {}]   ;;  %s2072_s5 = inlined_call_operand.vmem [shape: f32[1,128], index: 5, kind: input, shape index: {}]   ;;  %s2073_s6 = inlined_call_operand.vmem [shape: f32[1,128], index: 6, kind: input, shape index: {}]   ;;  %s2074_s7 = inlined_call_operand.vmem [shape: f32[1,128], index: 7, kind: input, shape index: {}]   ;;  %s2075_s8 = inlined_call_operand.vmem [shape: f32[1,128], index: 8, kind: input, shape index: {}]   ;;  %s2076_s9 = inlined_call_operand.vmem [shape: f32[1,128], index: 9, kind: input, shape index: {}]   ;;  %s2077_s10 = inlined_call_operand.<no memory space> [shape: f32[1], index: 10, kind: input, shape index: {}]   ;;  %s2078_s11 = inlined_call_operand.vmem [shape: f32[2,8,128], index: 11, kind: output, shape index: {}]  }
   0x1   :  { %16 = sst [smem:[#allocation2]] %s2077_s10 }
   0x2 LB: > { %s1483_s20 = sadd.s32 4294967295, %s1725_s19   ;;  %p1487_p0 = scmp.ge.s32.totalorder %s1725_s19, 1  ;;  %s1725_s19 = sphi %s1794_s19, %s22_s19  }
   0x3   : > { %p355_p1 = scmp.lt.s32.totalorder %s1725_s19, 3 }
   0x5   : > { %p356_p2 = pnand %p1487_p0, %p355_p1 }
   0x6   : > { %p401_p3 = scmp.lt.s32.totalorder (!%p356_p2), %s1483_s20, 1  ;;  %v420_v0 = vlaneseq (!%p356_p2)  ;;  %v1727_v1 = vmov (!%p356_p2), 0.0   ;;  %v1595_v9 = vld [vmem:[%s2070_s3] sm:$0xff] (!%p356_p2)   ;;  %v1596_v10 = vld [vmem:[%s2070_s3 + $0x8] sm:$0xff] (!%p356_p2)   ;;  %v1597_v11 = vld [vmem:[%s2070_s3 + $0x10] sm:$0xff] (!%p356_p2)   ;;  %vm1728_vm1 = vmmov (!%p356_p2), 0  }
   0x7   : > { %359 = sbr.rel (%p356_p2) target bundleno = 2150 (0x866), region = 64  ;;  %1555 = vmatprep.subr.bf16.mxu0 (!%p356_p2), %v1727_v1  ;;  %v1598_v12 = vld [vmem:[%s2070_s3 + $0x18] sm:$0xff] (!%p356_p2)   ;;  %v1599_v13 = vld [vmem:[%s2070_s3 + $0x20] sm:$0xff] (!%p356_p2)   ;;  %v1600_v14 = vld [vmem:[%s2070_s3 + $0x28] sm:$0xff] (!%p356_p2)   ;;  %1571 = vmatprep.mubr.msk.bf16.mxu0 (!%p356_p2), %vm1728_vm1, %v1727_v1  ;;  %v1729_v61 = vmov (!%p356_p2), 0   ;;  %vm1273_vm6 = vcmask (!%p356_p2), 1043456  }
   0x8   : > { %v1804_v2 = vand.u32 (!%p356_p2), 127, %v420_v0  ;;  %1556 = vmatpush3.bf16.msra.mxu0 (!%p356_p2), %v1595_v9  ;;  %v1601_v15 = vld [vmem:[%s2070_s3 + $0x30] sm:$0xff] (!%p356_p2)   ;;  %v1602_v16 = vld [vmem:[%s2070_s3 + $0x38] sm:$0xff] (!%p356_p2)   ;;  %v1603_v17 = vld [vmem:[%s2071_s4 + $0x4] ss:$8 sps:$4 sm:$0xff] (!%p356_p2)   ;;  %v1909_v57 = vshrl.u32 (!%p356_p2), %v420_v0, 7  ;;  %692 = vmatprep.mubr.bf16.mxu1 (!%p356_p2), %v1729_v61 }
   0x9   : > { %1557 = vmatprep.subr.bf16.mxu0 (!%p356_p2), %v1727_v1  ;;  %v1605_v18 = vld [vmem:[%s2071_s4] ss:$8 sps:$4 sm:$0xff] (!%p356_p2)   ;;  %v1606_v19 = vld [vmem:[%s2071_s4 + $0x14] ss:$8 sps:$4 sm:$0xff] (!%p356_p2)   ;;  %660 = vmatprep.subr.bf16.mxu1 (!%p356_p2), %v1603_v17  ;;  %v1608_v20 = vld [vmem:[%s2071_s4 + $0x10] ss:$8 sps:$4 sm:$0xff] (!%p356_p2)  }
   0xa   : > { %vm422_vm0 = vcmp.gt.s32.totalorder (!%p356_p2), %v1804_v2, 0  ;;  %661 = vmatpush1.bf16.msra.mxu1 (!%p356_p2), %v1605_v18  ;;  %v1609_v21 = vld [vmem:[%s2071_s4 + $0x24] ss:$8 sps:$4 sm:$0xff] (!%p356_p2)   ;;  %v1611_v22 = vld [vmem:[%s2071_s4 + $0x20] ss:$8 sps:$4 sm:$0xff] (!%p356_p2)   ;;  %v1915_v60 = vsub.s32 (!%p356_p2), 0, %v1909_v57  ;;  %1593 = vset.pattern.permute.xlu1 (!%p356_p2), %v1729_v61 }
   0xb   : > { %v1814_v3 = vsel (!%p356_p2), %vm422_vm0, 1.0, %v1727_v1  ;;  %662 = vmatprep.subr.bf16.mxu1 (!%p356_p2), %v1606_v19  ;;  %v1612_v23 = vld [vmem:[%s2071_s4 + $0x34] ss:$8 sps:$4 sm:$0xff] (!%p356_p2)   ;;  %v1614_v24 = vld [vmem:[%s2071_s4 + $0x30] ss:$8 sps:$4 sm:$0xff] (!%p356_p2)   ;;  %1594 = vset.pattern.permute.xlu0 (!%p356_p2), %v1729_v61  ;;  %v1918_v63 = vsub.s32 (!%p356_p2), 2, %v1909_v57 }
   0xc   : > { %v437_v5 = vsub.f32 (!%p356_p2), 1.0, %v1814_v3  ;;  %1558 = vmatpush3.bf16.msra.mxu0 (!%p356_p2), %v1596_v10  ;;  %v1615_v25 = vld [vmem:[%s2071_s4 + $0x44] ss:$8 sps:$4 sm:$0xff] (!%p356_p2)   ;;  %v1617_v26 = vld [vmem:[%s2071_s4 + $0x40] ss:$8 sps:$4 sm:$0xff] (!%p356_p2)   ;;  %v1921_v0 = vsub.s32 (!%p356_p2), 1, %v1909_v57 }
   0xd   : > { %1559 = vmatprep.subr.bf16.mxu0 (!%p356_p2), %v1727_v1  ;;  %v1618_v27 = vld [vmem:[%s2071_s4 + $0x54] ss:$8 sps:$4 sm:$0xff] (!%p356_p2)   ;;  %v1620_v28 = vld [vmem:[%s2071_s4 + $0x50] ss:$8 sps:$4 sm:$0xff] (!%p356_p2)   ;;  %v1621_v29 = vld [vmem:[%s2071_s4 + $0x64] ss:$8 sps:$4 sm:$0xff] (!%p356_p2)  }
   0xe   : > { %s2080_s20 = smov (!%p401_p3, %s1483_s20), 1  ;;  %663 = vmatpush1.bf16.msra.mxu1 %v1608_v20  ;;  %v1623_v30 = vld [vmem:[%s2071_s4 + $0x60] ss:$8 sps:$4 sm:$0xff]   ;;  %v1624_v31 = vld [vmem:[%s2071_s4 + $0x74] ss:$8 sps:$4 sm:$0xff]   ;;  %s1042_s30 = sld [smem:[#allocation2]] }
   0xf   : > { %s1806_s10 = sshll.u32 %s2080_s20, 3  ;;  %664 = vmatprep.subr.bf16.mxu1 %v1609_v21  ;;  %v1626_v58 = vld [vmem:[%s2071_s4 + $0x70] ss:$8 sps:$4 sm:$0xff]   ;;  %vm1254_vm7 = vcmask 1041409   ;;  %vm1256_vm8 = vcmask 1042434   ;;  %vm1258_vm9 = vcmask 1043459  }
  0x10   : > { %s404_s23 = scalar_lea.vmem %s2067_s0, %s1806_s10  ;;  %1560 = vmatpush3.bf16.msra.mxu0 %v1597_v11  ;;  %s408_s17 = scalar_lea.vmem %s2068_s1, %s1806_s10  ;;  %v1930_v11 = vsub.s32 3, %v1909_v57  ;;  %vm1260_vm10 = vcmask 1044484   ;;  %vm1262_vm11 = vcmask 1045509   ;;  %vm1264_vm12 = vcmask 1046534  }
  0x11   : > { %v419_v4 = vld [vmem:[%s404_s23] sm:$0xff]  ;;  %1561 = vmatprep.subr.bf16.mxu0 %v1727_v1  ;;  %s412_s29 = scalar_lea.vmem %s2069_s2, %s1806_s10  ;;  %vm1266_vm13 = vcmask 1047559   ;;  %vm1269_vm14 = vcmask 64512   ;;  %s416_s18 = scalar_lea.vmem %s2078_s11, %s1806_s10 }
  0x12   : > { %v1818_v6 = vmul.f32 %v1814_v3, %v419_v4  ;;  %v438_v7 = vmul.f32 %v437_v5, %v419_v4  ;;  %665 = vmatpush1.bf16.msra.mxu1 %v1611_v22  ;;  %v713_v56 = vld [vmem:[%s408_s17] sm:$0xff] }
  0x13   : > { %666 = vmatprep.subr.bf16.mxu1 %v1612_v23  ;;  %v714_v59 = vpack.c.bf16 %v713_v56, %v713_v56  ;;  %v709_v23 = vld [vmem:[%s2073_s6] sm:$0x1] }
  0x14   : > { %439 = vadd.xlane.f32.xlu0 %v438_v7  ;;  %v426_v8 = vmul.f32 %v1818_v6, %v1818_v6  ;;  %1562 = vmatpush3.bf16.msra.mxu0 %v1598_v12 }
  0x15   : > { %1563 = vmatprep.subr.bf16.mxu0 %v1727_v1  ;;  %v716_v62 = vpack.i.b16 %v714_v59, %v714_v59 }
  0x16   : > { %667 = vmatpush1.bf16.msra.mxu1 %v1614_v24  ;;  %v1730_v24 = vmov 1966171168  }
  0x17   : > { %668 = vmatprep.subr.bf16.mxu1 %v1615_v25  ;;  %v721_v4 = vrot.slane %v716_v62, %v1915_v60  ;;  %v738_v5 = vrot.slane %v716_v62, %v1921_v0  ;;  %v766_v12 = vrot.slane %v716_v62, %v1930_v11  ;;  %v780_v25 = vunpack.c.l.s4 %v1730_v24 }
  0x18   : > { %427 = vadd.xlane.f32.xlu0 %v426_v8  ;;  %1564 = vmatpush3.bf16.msra.mxu0 %v1599_v13 }
  0x19   : > { %1565 = vmatprep.subr.bf16.mxu0 %v1727_v1  ;;  %723 = vbcast.lane.c.b16.xlu1 %v721_v4, 256 }
  0x1a   : > { %669 = vmatpush1.bf16.msra.mxu1 %v1617_v26  ;;  %v710_v26 = vpack.c.bf16 %v709_v23, %v709_v23 }
  0x1b   : > { %670 = vmatprep.subr.bf16.mxu1 %v1618_v27  ;;  %v781_v27 = vunpack.c.0.s8 %v780_v25 }
  0x1c   : > { %1566 = vmatpush3.bf16.msra.mxu0 %v1600_v14 }
  0x1d   : > { %1567 = vmatprep.subr.bf16.mxu0 %v1727_v1 }
  0x1e   : > { %671 = vmatpush1.bf16.msra.mxu1 %v1620_v28 }
  0x1f   : > { %672 = vmatprep.subr.bf16.mxu1 %v1621_v29  ;;  %v1518_v29 = vld [vmem:[%s2072_s5] ss:$0 sm:$0xff] }
  0x20   : > { %1568 = vmatpush3.bf16.msra.mxu0 %v1601_v15 }
  0x21   : > { %1569 = vmatprep.subr.bf16.mxu0 %v1727_v1 }
  0x22   : > { %673 = vmatpush1.bf16.msra.mxu1 %v1623_v30  ;;  %v917_v30 = vpack.i.b16 %v710_v26, %v710_v26 }
  0x23   : > { %674 = vmatprep.subr.bf16.mxu1 %v1624_v31 }
  0x24   : > { %1570 = vmatpush3.bf16.msra.mxu0 %v1602_v16 }
  0x25   : > { %1575 = vmatprep.subr.bf16.mxu0 %v1727_v1 }
  0x26   : > { %675 = vmatpush1.bf16.msra.mxu1 %v1626_v58 }
  0x2e   : > { %740 = vbcast.lane.c.b16.xlu0 %v738_v5, 256 }
  0x8b   : > { %v1934_v20 = vpop.permute.xlu1 %723 }
  0xa1   : > { %v440_v32 = vpop.xlane.xlu0 %439 }
  0xa2   : > { %v441_v33 = vmax.f32 %v440_v32, 1.0000001 }
  0xa4   : > { %v442_v34 = vmul.f32 %v441_v33, %v441_v33 }
  0xa5   : > { %v428_v35 = vpop.xlane.xlu0 %427 }
  0xa6   : > { %v1493_v36 = vadd.f32 -1.0, %v442_v34  ;;  %1627 = vrsqrt.f32 %v428_v35  ;;  %vm431_vm2 = vcmp.eq.f32.partialorder %v428_v35, inf  ;;  %v434_v42 = vand.u32 2147483648, %v428_v35 }
  0xa7   : > { %vm433_vm3 = vcmp.eq.f32.partialorder %v428_v35, 0.0 }
  0xa8   : > { %v444_v37 = vmax.f32 %v1493_v36, 1e-07 }
  0xaa   : > { %1629 = vrsqrt.f32 %v444_v37  ;;  %vm447_vm4 = vcmp.eq.f32.partialorder %v444_v37, inf  ;;  %v450_v44 = vand.u32 2147483648, %v444_v37  ;;  %vm449_vm5 = vcmp.eq.f32.partialorder %v444_v37, 0.0 }
  0xb0   : > { %v1628_v38 = vpop.eup %1627 }
  0xb1   : > { %v430_v39 = vmul.f32 %v1628_v38, %v428_v35 }
  0xb3   : > { %v432_v40 = vsel %vm431_vm2, %v428_v35, %v430_v39  ;;  %v1952_v39 = vrot.slane %v917_v30, %v1915_v60 }
  0xb4   : > { %v1630_v41 = vpop.eup %1629  ;;  %v435_v45 = vsel %vm433_vm3, %v434_v42, %v432_v40  ;;  %vm1401_vm3 = vcmp.eq.s32.totalorder %v1804_v2, 0 }
  0xb5   : > { %v446_v43 = vmul.f32 %v1630_v41, %v444_v37  ;;  %v436_v49 = vmax.f32 %v435_v45, 1e-15 }
  0xb7   : > { %v448_v46 = vsel %vm447_vm4, %v444_v37, %v446_v43  ;;  %v741_v43 = vpop.permute.xlu0 %740 }
  0xb8   : > { %v451_v47 = vsel %vm449_vm5, %v450_v44, %v448_v46  ;;  %v923_v44 = vmul.bf16 %v1952_v39, %v1934_v20 }
  0xb9   : > { %v452_v48 = vadd.f32 %v451_v47, %v441_v33  ;;  %v784_v33 = vsub.s32 %v781_v27, %v1909_v57 }
  0xbb   : > { %1631 = vlog2.f32 %v452_v48 }
  0xbc   : > { %1633 = vrcp.f32 %v436_v49 }
  0xc5   : > { %v1632_v50 = vpop.eup %1631 }
  0xc6   : > { %v454_v51 = vmul.f32 0.6931472, %v1632_v50  ;;  %v1634_v52 = vpop.eup %1633 }
  0xc8   : > { %v456_v53 = vmul.f32 %v1634_v52, %v454_v51 }
  0xca   : > { %v457_v54 = vmul.f32 %v456_v53, %v1818_v6  ;;  %v752_v6 = vrot.slane %v716_v62, %v1918_v63 }
  0xcc   : > { %v458_v55 = vpack.c.bf16 %v457_v54, %v457_v54  ;;  %754 = vbcast.lane.c.b16.xlu1 %v752_v6, 256 }
  0xce   : > { %1572 = vmatmul.mubr.bf16.vlgmr.msra.gmra.mrb[0].mxu0 %v458_v55  ;;  %v925_v55 = vmul.bf16 %v1952_v39, %v741_v43 }
  0xcf   : > { %1577 = vmatprep.mubr.msk.bf16.mxu0 %vm1728_vm1, %v1727_v1  ;;  %v725_v1 = vshrl.u32 %v714_v59, 16 }
  0xd1   : > { %v726_v7 = vpack.i.b16 %v725_v1, %v725_v1 }
  0xd3   : > { %v731_v8 = vrot.slane %v726_v7, %v1915_v60  ;;  %v745_v9 = vrot.slane %v726_v7, %v1921_v0  ;;  %v759_v10 = vrot.slane %v726_v7, %v1918_v63  ;;  %v773_v13 = vrot.slane %v726_v7, %v1930_v11 }
  0xd5   : > { %733 = vbcast.lane.c.b16.xlu1 %v731_v8, 256 }
  0xd9   : > { %747 = vbcast.lane.c.b16.xlu1 %v745_v9, 256 }
  0xdd   : > { %761 = vbcast.lane.c.b16.xlu1 %v759_v10, 256 }
  0xe1   : > { %768 = vbcast.lane.c.b16.xlu1 %v766_v12, 256 }
  0xe5   : > { %775 = vbcast.lane.c.b16.xlu1 %v773_v13, 256 }
 0x13e   : > { %v1936_v21 = vpop.permute.xlu1 %754 }
 0x13f   : > { %v927_v45 = vmul.bf16 %v1952_v39, %v1936_v21 }
 0x147   : > { %v1938_v22 = vpop.permute.xlu1 %733 }
 0x148   : > { %v924_v46 = vmul.bf16 %v1952_v39, %v1938_v22 }
 0x14b   : > { %v1943_v28 = vpop.permute.xlu1 %747 }
 0x14c   : > { %v926_v52 = vmul.bf16 %v1952_v39, %v1943_v28 }
 0x14f   : > { %v1949_v38 = vpop.permute.xlu1 %761 }
 0x150   : > { %v928_v53 = vmul.bf16 %v1952_v39, %v1949_v38 }
 0x153   : > { %v769_v51 = vpop.permute.xlu1 %768 }
 0x154   : > { %v929_v54 = vmul.bf16 %v1952_v39, %v769_v51 }
 0x1a1   : > { %v557_v14 = vpop.f32.mrb[0].mxu0 }
 0x1a2   : > { %v563_v15 = vpack.c.bf16 %v557_v14, %v557_v14  ;;  %v1573_v16 = vpop.f32.mrb[1].mxu0 }
 0x1a3   : > { %v560_v17 = vpop.f32.mrb[2].mxu0 }
 0x1a4   : > { %v1275_v18 = vsel %vm1273_vm6, %v563_v15, 0  ;;  %v1574_v19 = vpop.f32.mrb[3].mxu0  ;;  %693 = vmatmul.mubr.bf16.vlgmr.msra.gmra.mrb[0].mxu1 %v563_v15 }
 0x1a5   : > { %1576 = vmatpush3.bf16.msra.mxu0 %v1275_v18 }
 0x277   : > { %v694_v31 = vpop.f32.mrb[0].mxu1 }
 0x278   : > { %v708_v32 = vadd.f32 %v1518_v29, %v694_v31  ;;  %v696_v34 = vpop.f32.mrb[1].mxu1 }
 0x279   : > { %v698_v35 = vpop.f32.mrb[2].mxu1  ;;  %v1967_v62 = vpack.c.bf16 %v696_v34, %v696_v34 }
 0x27a   : > { %v777_v36 = vpack.c.bf16 %v708_v32, %v708_v32  ;;  %v699_v37 = vpop.f32.mrb[3].mxu1 }
 0x27c   : > { %v785_v40 = vrot.slane %v777_v36, %v784_v33 }
 0x27e   : > { %v786_v41 = vcombine.high %v785_v40, %v785_v40  ;;  %v793_v42 = vrot.slane %v785_v40, %v784_v33 }
 0x280   : > { %v800_v47 = vrot.slane %v786_v41, %v784_v33  ;;  %v801_v48 = vcombine.high %v793_v42, %v793_v42  ;;  %v804_v49 = vunpack.i.h.s16 %v793_v42  ;;  %v1519_v50 = vpack.i.b16 %v793_v42, %v793_v42 }
 0x282   : > { %v802_v56 = vcombine.high %v800_v47, %v800_v47  ;;  %v813_v58 = vpack.i.b16 %v804_v49, %v804_v49  ;;  %v823_v59 = vrot.slane %v1519_v50, %v1915_v60  ;;  %v1521_v61 = vpack.i.b16 %v801_v48, %v801_v48 }
 0x283   : > { %v806_v1 = vunpack.i.h.s16 %v800_v47  ;;  %v808_v4 = vunpack.i.h.s16 %v801_v48  ;;  %v1520_v5 = vpack.i.b16 %v800_v47, %v800_v47 }
 0x284   : > { %v839_v6 = vrot.slane %v1521_v61, %v1915_v60  ;;  %v827_v7 = vrot.slane %v813_v58, %v1915_v60  ;;  %v1522_v8 = vpack.i.b16 %v802_v56, %v802_v56  ;;  %v810_v9 = vunpack.i.h.s16 %v802_v56 }
 0x285   : > { %v815_v10 = vpack.i.b16 %v806_v1, %v806_v1  ;;  %v817_v12 = vpack.i.b16 %v808_v4, %v808_v4  ;;  %v831_v13 = vrot.slane %v1520_v5, %v1915_v60  ;;  %v853_v14 = vpack.i.b16 %v823_v59, %v823_v59 }
 0x286   : > { %v881_v15 = vpack.i.b16 %v839_v6, %v839_v6  ;;  %v860_v16 = vpack.i.b16 %v827_v7, %v827_v7  ;;  %v847_v17 = vrot.slane %v1522_v8, %v1915_v60  ;;  %v819_v18 = vpack.i.b16 %v810_v9, %v810_v9 }
 0x287   : > { %v835_v19 = vrot.slane %v815_v10, %v1915_v60  ;;  %v843_v20 = vrot.slane %v817_v12, %v1915_v60  ;;  %v867_v21 = vpack.i.b16 %v831_v13, %v831_v13  ;;  %v858_v22 = vrot.slane %v853_v14, %v1915_v60  ;;  %v711_v10 = vld [vmem:[%s2074_s7] sm:$0x1] }
 0x288   : > { %v886_v23 = vrot.slane %v881_v15, %v1915_v60  ;;  %v865_v24 = vrot.slane %v860_v16, %v1915_v60  ;;  %v895_v25 = vpack.i.b16 %v847_v17, %v847_v17  ;;  %v851_v26 = vrot.slane %v819_v18, %v1915_v60 }
 0x289   : > { %v874_v27 = vpack.i.b16 %v835_v19, %v835_v19  ;;  %v888_v28 = vpack.i.b16 %v843_v20, %v843_v20  ;;  %v872_v29 = vrot.slane %v867_v21, %v1915_v60  ;;  %v908_v30 = vadd.bf16 %v858_v22, %v1967_v62 }
 0x28a   : > { %v912_v31 = vadd.bf16 %v886_v23, %v1967_v62  ;;  %v909_v32 = vadd.bf16 %v865_v24, %v1967_v62  ;;  %v900_v33 = vrot.slane %v895_v25, %v1915_v60  ;;  %v902_v34 = vpack.i.b16 %v851_v26, %v851_v26 }
 0x28b   : > { %v879_v35 = vrot.slane %v874_v27, %v1915_v60  ;;  %v893_v36 = vrot.slane %v888_v28, %v1915_v60  ;;  %v910_v37 = vadd.bf16 %v872_v29, %v1967_v62  ;;  %v931_v38 = vadd.bf16 %v923_v44, %v908_v30 }
 0x28c   : > { %v1987_v40 = vadd.bf16 %v927_v45, %v912_v31  ;;  %v932_v41 = vadd.bf16 %v924_v46, %v909_v32  ;;  %v914_v42 = vadd.bf16 %v900_v33, %v1967_v62  ;;  %v1991_v43 = vrot.slane %v902_v34, %v1915_v60 }
 0x28d   : > { %v911_v47 = vadd.bf16 %v879_v35, %v1967_v62  ;;  %v913_v48 = vadd.bf16 %v893_v36, %v1967_v62  ;;  %v1995_v49 = vadd.bf16 %v925_v55, %v910_v37  ;;  %v1523_v50 = vmul.bf16 3216621497, %v931_v38 }
 0x28e   : > { %v1527_v51 = vmul.bf16 3216621497, %v1987_v40  ;;  %v1524_v56 = vmul.bf16 3216621497, %v932_v41  ;;  %v1998_v58 = vadd.bf16 %v929_v54, %v914_v42  ;;  %v915_v44 = vadd.bf16 %v1991_v43, %v1967_v62 }
 0x28f   : > { %v934_v45 = vadd.bf16 %v926_v52, %v911_v47  ;;  %v936_v46 = vadd.bf16 %v928_v53, %v913_v48  ;;  %1635 = vpow.bf16 %v1523_v50  ;;  %v1525_v55 = vmul.bf16 3216621497, %v1995_v49  ;;  %v776_v50 = vpop.permute.xlu1 %775 }
 0x290   : > { %1637 = vpow.bf16 %v1527_v51  ;;  %v1529_v59 = vmul.bf16 3216621497, %v1998_v58  ;;  %v712_v17 = vpack.c.bf16 %v711_v10, %v711_v10 }
 0x291   : > { %1639 = vpow.bf16 %v1524_v56  ;;  %v1526_v61 = vmul.bf16 3216621497, %v934_v45  ;;  %v1528_v1 = vmul.bf16 3216621497, %v936_v46 }
 0x292   : > { %1641 = vpow.bf16 %v1529_v59  ;;  %v1004_v18 = vpack.i.b16 %v712_v17, %v712_v17 }
 0x293   : > { %1643 = vpow.bf16 %v1526_v61 }
 0x294   : > { %1645 = vpow.bf16 %v1528_v1  ;;  %v2008_v22 = vrot.slane %v1004_v18, %v1915_v60  ;;  %v1146_v18 = vsub.s32 6, %v1909_v57 }
 0x295   : > { %1647 = vpow.bf16 %v1525_v55 }
 0x29a   : > { %v1636_v54 = vpop.eup %1635 }
 0x29b   : > { %v1638_v4 = vpop.eup %1637  ;;  %v971_v5 = vadd.bf16 1065369472, %v1636_v54 }
 0x29c   : > { %v1640_v6 = vpop.eup %1639  ;;  %v975_v7 = vadd.bf16 1065369472, %v1638_v4 }
 0x29d   : > { %v1642_v52 = vpop.eup %1641  ;;  %v972_v53 = vadd.bf16 1065369472, %v1640_v6  ;;  %1649 = vrcp.bf16 %v971_v5 }
 0x29e   : > { %v1644_v8 = vpop.eup %1643  ;;  %1651 = vrcp.bf16 %v975_v7  ;;  %v977_v9 = vadd.bf16 1065369472, %v1642_v52 }
 0x29f   : > { %v1646_v12 = vpop.eup %1645  ;;  %1653 = vrcp.bf16 %v972_v53  ;;  %v974_v13 = vadd.bf16 1065369472, %v1644_v8  ;;  %v1139_v53 = vsub.s32 5, %v1909_v57 }
 0x2a0   : > { %v1648_v14 = vpop.eup %1647  ;;  %v976_v15 = vadd.bf16 1065369472, %v1646_v12  ;;  %1655 = vrcp.bf16 %v977_v9  ;;  %v1153_v9 = vsub.s32 7, %v1909_v57 }
 0x2a1   : > { %1657 = vrcp.bf16 %v974_v13  ;;  %v973_v16 = vadd.bf16 1065369472, %v1648_v14 }
 0x2a2   : > { %1659 = vrcp.bf16 %v976_v15 }
 0x2a3   : > { %1661 = vrcp.bf16 %v973_v16 }
 0x2a8   : > { %v1650_v19 = vpop.eup %1649 }
 0x2a9   : > { %v1652_v20 = vpop.eup %1651  ;;  %v980_v21 = vmul.bf16 1065369472, %v1650_v19 }
 0x2aa   : > { %v1654_v23 = vpop.eup %1653  ;;  %v988_v28 = vmul.bf16 1065369472, %v1652_v20  ;;  %v2037_v20 = vstv %s1042_s30 }
 0x2ab   : > { %v1656_v24 = vpop.eup %1655  ;;  %v995_v25 = vmul.bf16 %v980_v21, %v931_v38  ;;  %v982_v26 = vmul.bf16 1065369472, %v1654_v23 }
 0x2ac   : > { %v1658_v27 = vpop.eup %1657  ;;  %v999_v48 = vmul.bf16 %v988_v28, %v1987_v40  ;;  %v992_v59 = vmul.bf16 1065369472, %v1656_v24 }
 0x2ad   : > { %v1660_v29 = vpop.eup %1659  ;;  %v1010_v30 = vmul.bf16 %v2008_v22, %v995_v25  ;;  %v996_v31 = vmul.bf16 %v982_v26, %v932_v41  ;;  %v986_v32 = vmul.bf16 1065369472, %v1658_v27 }
 0x2ae   : > { %v1662_v33 = vpop.eup %1661  ;;  %v990_v34 = vmul.bf16 1065369472, %v1660_v29  ;;  %v1014_v40 = vmul.bf16 %v2008_v22, %v999_v48  ;;  %v1001_v55 = vmul.bf16 %v992_v59, %v1998_v58 }
 0x2af   : > { %v1018_v35 = vunpack.c.l.bf16 %v1010_v30  ;;  %v1011_v36 = vmul.bf16 %v2008_v22, %v996_v31  ;;  %v998_v37 = vmul.bf16 %v986_v32, %v934_v45  ;;  %v984_v42 = vmul.bf16 1065369472, %v1662_v33 }
 0x2b0   : > { %v1000_v47 = vmul.bf16 %v990_v34, %v936_v46  ;;  %v930_v45 = vmul.bf16 %v1952_v39, %v776_v50  ;;  %v1022_v4 = vunpack.c.l.bf16 %v1014_v40  ;;  %v1016_v5 = vmul.bf16 %v2008_v22, %v1001_v55  ;;  %v1100_v39 = vld [vmem:[%s412_s29] sm:$0xff] }
 0x2b1   : > { %1026 = vadd.xlane.f32.xlu1 %v1018_v35  ;;  %v1019_v38 = vunpack.c.l.bf16 %v1011_v36  ;;  %v1013_v51 = vmul.bf16 %v2008_v22, %v998_v37  ;;  %v997_v56 = vmul.bf16 %v984_v42, %v1995_v49  ;;  %v1112_v58 = vrot.slane %v1100_v39, %v1921_v0 }
 0x2b2   : > { %v1015_v1 = vmul.bf16 %v2008_v22, %v1000_v47  ;;  %v938_v49 = vadd.bf16 %v930_v45, %v915_v44  ;;  %v1024_v7 = vunpack.c.l.bf16 %v1016_v5  ;;  %v1105_v43 = vrot.slane %v1100_v39, %v1915_v60 }
 0x2b3   : > { %1028 = vadd.xlane.f32.xlu0 %v1019_v38  ;;  %v1021_v41 = vunpack.c.l.bf16 %v1013_v51  ;;  %v1012_v61 = vmul.bf16 %v2008_v22, %v997_v56  ;;  %v1126_v44 = vrot.slane %v1100_v39, %v1930_v11  ;;  %v1140_v8 = vrot.slane %v1100_v39, %v1139_v53 }
 0x2b4   : > { %v1023_v54 = vunpack.c.l.bf16 %v1015_v1  ;;  %v1530_v6 = vmul.bf16 3216621497, %v938_v49  ;;  %v1154_v12 = vrot.slane %v1100_v39, %v1153_v9  ;;  %v1119_v16 = vrot.slane %v1100_v39, %v1918_v63 }
 0x2b5   : > { %1032 = vadd.xlane.f32.xlu1 %v1021_v41  ;;  %v1020_v46 = vunpack.c.l.bf16 %v1012_v61  ;;  %v1132_v11 = vsub.s32 4, %v1909_v57  ;;  %v1147_v19 = vrot.slane %v1100_v39, %v1146_v18 }
 0x2b6   : > { %1663 = vpow.bf16 %v1530_v6 }
 0x2b7   : > { %1030 = vadd.xlane.f32.xlu0 %v1020_v46  ;;  %v1133_v17 = vrot.slane %v1100_v39, %v1132_v11 }
 0x2b9   : > { %1036 = vadd.xlane.f32.xlu1 %v1023_v54 }
 0x2bb   : > { %1034 = vadd.xlane.f32.xlu0 %v1022_v4 }
 0x2bf   : > { %1038 = vadd.xlane.f32.xlu0 %v1024_v7 }
 0x2c1   : > { %v1664_v52 = vpop.eup %1663 }
 0x2c2   : > { %v978_v62 = vadd.bf16 1065369472, %v1664_v52 }
 0x2c4   : > { %1665 = vrcp.bf16 %v978_v62 }
 0x2ca   : > { %1114 = vbcast.lane.b32.xlu1 %v1112_v58, 256 }
 0x2cf   : > { %v1666_v10 = vpop.eup %1665 }
 0x2d0   : > { %v994_v13 = vmul.bf16 1065369472, %v1666_v10 }
 0x2d2   : > { %v1002_v0 = vmul.bf16 %v994_v13, %v938_v49 }
 0x2d4   : > { %v1017_v14 = vmul.bf16 %v2008_v22, %v1002_v0 }
 0x2d5   : > { %1107 = vbcast.lane.b32.xlu0 %v1105_v43, 256 }
 0x2d6   : > { %v1025_v15 = vunpack.c.l.bf16 %v1017_v14 }
 0x2d9   : > { %1128 = vbcast.lane.b32.xlu0 %v1126_v44, 256 }
 0x2dd   : > { %1142 = vbcast.lane.b32.xlu0 %v1140_v8, 256 }
 0x2e1   : > { %1156 = vbcast.lane.b32.xlu0 %v1154_v12, 256 }
 0x2ee   : > { %1040 = vadd.xlane.f32.xlu1 %v1025_v15 }
 0x2ff   : > { %1121 = vbcast.lane.b32.xlu1 %v1119_v16, 256 }
 0x303   : > { %1135 = vbcast.lane.b32.xlu1 %v1133_v17, 256 }
 0x307   : > { %1149 = vbcast.lane.b32.xlu1 %v1147_v19, 256 }
 0x33e   : > { %v1027_v21 = vpop.xlane.xlu1 %1026 }
 0x33f   : > { %v1044_v23 = vadd.f32 %v2037_v20, %v1027_v21 }
 0x340   : > { %v1029_v22 = vpop.xlane.xlu0 %1028 }
 0x341   : > { %v1531_v24 = vmul.f32 -1.442695, %v1044_v23  ;;  %v1045_v25 = vadd.f32 %v2037_v20, %v1029_v22 }
 0x342   : > { %v1033_v32 = vpop.xlane.xlu1 %1032 }
 0x343   : > { %1667 = vpow2.f32 %v1531_v24  ;;  %v1532_v63 = vmul.f32 -1.442695, %v1045_v25  ;;  %v1047_v37 = vadd.f32 %v2037_v20, %v1033_v32 }
 0x344   : > { %v1031_v26 = vpop.xlane.xlu0 %1030 }
 0x345   : > { %1669 = vpow2.f32 %v1532_v63  ;;  %v1046_v48 = vadd.f32 %v2037_v20, %v1031_v26  ;;  %v1534_v56 = vmul.f32 -1.442695, %v1047_v37 }
 0x346   : > { %v1037_v34 = vpop.xlane.xlu1 %1036 }
 0x347   : > { %v1049_v59 = vadd.f32 %v2037_v20, %v1037_v34  ;;  %v1533_v1 = vmul.f32 -1.442695, %v1046_v48 }
 0x348   : > { %v1035_v29 = vpop.xlane.xlu0 %1034 }
 0x349   : > { %v1048_v45 = vadd.f32 %v2037_v20, %v1035_v29  ;;  %v1536_v40 = vmul.f32 -1.442695, %v1049_v59 }
 0x34a   : > { %v1115_v50 = vpop.permute.xlu1 %1114 }
 0x34b   : > { %v1535_v55 = vmul.f32 -1.442695, %v1048_v45 }
 0x34c   : > { %v1039_v33 = vpop.xlane.xlu0 %1038 }
 0x34d   : > { %v1668_v27 = vpop.eup %1667  ;;  %v1050_v54 = vadd.f32 %v2037_v20, %v1039_v33 }
 0x34e   : > { %v1076_v28 = vadd.f32 1.0, %v1668_v27 }
 0x34f   : > { %v1670_v30 = vpop.eup %1669  ;;  %v1537_v49 = vmul.f32 -1.442695, %v1050_v54 }
 0x350   : > { %1671 = vrcp.f32 %v1076_v28  ;;  %v1077_v31 = vadd.f32 1.0, %v1670_v30  ;;  %v1108_v35 = vpop.permute.xlu0 %1107 }
 0x352   : > { %1673 = vrcp.f32 %v1077_v31 }
 0x353   : > { %1675 = vpow2.f32 %v1534_v56  ;;  %v1224_v56 = vsub.s32 %v1804_v2, %v1909_v57 }
 0x354   : > { %1677 = vpow2.f32 %v1533_v1  ;;  %v1129_v53 = vpop.permute.xlu0 %1128 }
 0x355   : > { %1679 = vpow2.f32 %v1536_v40 }
 0x356   : > { %1681 = vpow2.f32 %v1535_v55 }
 0x357   : > { %1683 = vpow2.f32 %v1537_v49 }
 0x358   : > { %v1143_v11 = vpop.permute.xlu0 %1142 }
 0x35a   : > { %v1672_v36 = vpop.eup %1671 }
 0x35b   : > { %v1166_v42 = vmul.f32 %v1672_v36, %v1108_v35 }
 0x35c   : > { %v1674_v47 = vpop.eup %1673  ;;  %v1157_v35 = vpop.permute.xlu0 %1156 }
 0x35d   : > { %v1167_v38 = vmul.f32 %v1674_v47, %v1115_v50  ;;  %v1174_v51 = vpack.c.bf16 %v1166_v42, %v1166_v42  ;;  %v1676_v4 = vpop.eup %1675 }
 0x35e   : > { %v1678_v5 = vpop.eup %1677  ;;  %v1079_v6 = vadd.f32 1.0, %v1676_v4 }
 0x35f   : > { %v1175_v41 = vpack.c.bf16 %v1167_v38, %v1167_v38  ;;  %v1190_v61 = vunpack.c.l.b16 %v1174_v51  ;;  %v1680_v7 = vpop.eup %1679  ;;  %v1078_v39 = vadd.f32 1.0, %v1678_v5 }
 0x360   : > { %v1682_v58 = vpop.eup %1681  ;;  %1685 = vrcp.f32 %v1079_v6  ;;  %v1081_v52 = vadd.f32 1.0, %v1680_v7 }
 0x361   : > { %v1191_v46 = vunpack.c.l.b16 %v1175_v41  ;;  %1199 = vperm.xlu1 %1593, %v1190_v61   ;;  %1687 = vrcp.f32 %v1078_v39  ;;  %v1080_v62 = vadd.f32 1.0, %v1682_v58  ;;  %v1684_v43 = vpop.eup %1683 }
 0x362   : > { %1689 = vrcp.f32 %v1081_v52  ;;  %v1082_v44 = vadd.f32 1.0, %v1684_v43 }
 0x363   : > { %1202 = vperm.xlu0 %1594, %v1191_v46   ;;  %1691 = vrcp.f32 %v1080_v62 }
 0x364   : > { %1693 = vrcp.f32 %v1082_v44 }
 0x36a   : > { %v1686_v10 = vpop.eup %1685 }
 0x36b   : > { %v1688_v13 = vpop.eup %1687  ;;  %v1169_v14 = vmul.f32 %v1686_v10, %v1129_v53 }
 0x36c   : > { %v1690_v16 = vpop.eup %1689 }
 0x36d   : > { %v1692_v18 = vpop.eup %1691  ;;  %v1177_v21 = vpack.c.bf16 %v1169_v14, %v1169_v14  ;;  %v1171_v23 = vmul.f32 %v1690_v16, %v1143_v11 }
 0x36f   : > { %v1193_v26 = vunpack.c.l.b16 %v1177_v21  ;;  %v1179_v27 = vpack.c.bf16 %v1171_v23, %v1171_v23 }
 0x371   : > { %v1195_v33 = vunpack.c.l.b16 %v1179_v27 }
 0x37b   : > { %v1041_v8 = vpop.xlane.xlu1 %1040 }
 0x37c   : > { %v1051_v9 = vadd.f32 %v2037_v20, %v1041_v8  ;;  %v1694_v20 = vpop.eup %1693 }
 0x37e   : > { %v1538_v12 = vmul.f32 -1.442695, %v1051_v9 }
 0x37f   : > { %v1122_v0 = vpop.permute.xlu1 %1121 }
 0x380   : > { %1695 = vpow2.f32 %v1538_v12  ;;  %v1168_v15 = vmul.f32 %v1688_v13, %v1122_v0 }
 0x382   : > { %v1176_v17 = vpack.c.bf16 %v1168_v15, %v1168_v15 }
 0x383   : > { %v1136_v19 = vpop.permute.xlu1 %1135 }
 0x384   : > { %v1192_v22 = vunpack.c.l.b16 %v1176_v17  ;;  %v1170_v24 = vmul.f32 %v1692_v18, %v1136_v19  ;;  %v1330_v19 = vld [vmem:[%s2076_s9] sm:$0x1] }
 0x385   : > { %v1341_v21 = vmul.f32 %v1814_v3, %v1330_v19 }
 0x386   : > { %v1178_v25 = vpack.c.bf16 %v1170_v24, %v1170_v24  ;;  %1205 = vperm.xlu1 %1593, %v1192_v22   ;;  %v1540_v22 = vld [vmem:[%s2075_s8] ss:$0 sm:$0xff] }
 0x387   : > { %v1150_v63 = vpop.permute.xlu1 %1149 }
 0x388   : > { %v1194_v28 = vunpack.c.l.b16 %v1178_v25  ;;  %v1172_v29 = vmul.f32 %v1694_v20, %v1150_v63  ;;  %v1346_v25 = vrot.slane %v1341_v21, %v1915_v60 }
 0x38a   : > { %v1696_v30 = vpop.eup %1695  ;;  %v1180_v31 = vpack.c.bf16 %v1172_v29, %v1172_v29  ;;  %1211 = vperm.xlu0 %1594, %v1194_v28   ;;  %1208 = vperm.xlu1 %1593, %v1193_v26  }
 0x38b   : > { %v1083_v32 = vadd.f32 1.0, %v1696_v30 }
 0x38c   : > { %v1196_v34 = vunpack.c.l.b16 %v1180_v31 }
 0x38d   : > { %1697 = vrcp.f32 %v1083_v32 }
 0x38e   : > { %1217 = vperm.xlu0 %1594, %v1196_v34   ;;  %1214 = vperm.xlu1 %1593, %v1195_v33  }
 0x397   : > { %v1698_v36 = vpop.eup %1697 }
 0x398   : > { %v1173_v37 = vmul.f32 %v1698_v36, %v1157_v35 }
 0x39a   : > { %v1181_v42 = vpack.c.bf16 %v1173_v37, %v1173_v37 }
 0x39c   : > { %v1197_v47 = vunpack.c.l.b16 %v1181_v42 }
 0x39e   : > { %1220 = vperm.xlu1 %1593, %v1197_v47  }
 0x3e0   : > { %v1200_v48 = vpop.permute.xlu1 %1199 }
 0x3e1   : > { %v1225_v1 = vrot.slane %v1200_v48, %v1224_v56 }
 0x3e2   : > { %v1203_v38 = vpop.permute.xlu0 %1202 }
 0x3e3   : > { %v1229_v59 = vrot.slane %v1203_v38, %v1224_v56 }
 0x3e5   : > { %v1255_v40 = vsel %vm1254_vm7, %v1229_v59, %v1225_v1 }
 0x405   : > { %v1206_v50 = vpop.permute.xlu1 %1205 }
 0x406   : > { %v1233_v61 = vrot.slane %v1206_v50, %v1224_v56 }
 0x408   : > { %v1257_v55 = vsel %vm1256_vm8, %v1233_v61, %v1255_v40 }
 0x409   : > { %v1209_v51 = vpop.permute.xlu1 %1208  ;;  %v1212_v41 = vpop.permute.xlu0 %1211 }
 0x40a   : > { %v1237_v45 = vrot.slane %v1209_v51, %v1224_v56  ;;  %v1241_v54 = vrot.slane %v1212_v41, %v1224_v56 }
 0x40c   : > { %v1259_v49 = vsel %vm1258_vm9, %v1237_v45, %v1257_v55 }
 0x40d   : > { %v1215_v46 = vpop.permute.xlu1 %1214  ;;  %v1218_v5 = vpop.permute.xlu0 %1217  ;;  %v1261_v6 = vsel %vm1260_vm10, %v1241_v54, %v1259_v49 }
 0x40e   : > { %v1245_v4 = vrot.slane %v1215_v46, %v1224_v56  ;;  %v1249_v7 = vrot.slane %v1218_v5, %v1224_v56 }
 0x410   : > { %v1263_v57 = vsel %vm1262_vm11, %v1245_v4, %v1261_v6 }
 0x411   : > { %v1265_v52 = vsel %vm1264_vm12, %v1249_v7, %v1263_v57 }
 0x41d   : > { %v1221_v39 = vpop.permute.xlu1 %1220 }
 0x41e   : > { %v1253_v58 = vrot.slane %v1221_v39, %v1224_v56 }
 0x420   : > { %v1267_v62 = vsel %vm1266_vm13, %v1253_v58, %v1265_v52 }
 0x421   : > { %v1268_v43 = vpack.c.b16 %v1267_v62, %v1267_v62 }
 0x423   : > { %1578 = vmatmul.mubr.msk.bf16.vlgmr.msra.gmra.mrb[4].mxu0 %vm1269_vm14, %v1268_v43 }
 0x4f6   : > { %v1311_v44 = vpop.f32.mrb[4].mxu0 }
 0x4f7   : > { %v1317_v53 = vmul.f32 0.01, %v1311_v44  ;;  %v1579_v8 = vpop.f32.mrb[5].mxu0 }
 0x4f8   : > { %v1314_v9 = vpop.f32.mrb[6].mxu0 }
 0x4f9   : > { %v1580_v10 = vpop.f32.mrb[7].mxu0  ;;  %v1318_v12 = vmul.f32 %v1814_v3, %v1317_v53 }
 0x4fb   : > { %1319 = vadd.xlane.f32.xlu0 %v1318_v12 }
 0x588   : > { %v1320_v13 = vpop.xlane.xlu0 %1319 }
 0x589   : > { %v1322_v0 = vmul.f32 0.007874016, %v1320_v13 }
 0x58b   : > { %v1323_v14 = vsub.f32 %v1317_v53, %v1322_v0 }
 0x58d   : > { %v1324_v15 = vmul.f32 %v1814_v3, %v1323_v14 }
 0x58f   : > { %v1325_v16 = vmul.f32 %v1324_v15, %v1324_v15 }
 0x591   : > { %1326 = vadd.xlane.f32.xlu1 %v1325_v16 }
 0x61e   : > { %v1327_v11 = vpop.xlane.xlu1 %1326 }
 0x61f   : > { %v1328_v17 = vmul.f32 0.007874016, %v1327_v11 }
 0x621   : > { %v1331_v18 = vadd.f32 1e-05, %v1328_v17 }
 0x623   : > { %1699 = vrsqrt.f32 %v1331_v18 }
 0x62d   : > { %v1700_v23 = vpop.eup %1699 }
 0x62e   : > { %v1333_v24 = vmul.f32 %v1700_v23, %v1324_v15 }
 0x630   : > { %v1340_v20 = vmul.f32 %v1540_v22, %v1333_v24 }
 0x632   : > { %v1348_v63 = vadd.f32 %v1346_v25, %v1340_v20 }
 0x634   : > { %v1349_v26 = vmul.f32 %v1348_v63, %v1348_v63 }
 0x636   : > { %1350 = vadd.xlane.f32.xlu0 %v1349_v26 }
 0x6c3   : > { %v1351_v27 = vpop.xlane.xlu0 %1350 }
 0x6c4   : > { %1701 = vrsqrt.f32 %v1351_v27  ;;  %vm1354_vm15 = vcmp.eq.f32.partialorder %v1351_v27, inf  ;;  %v1357_v30 = vand.u32 2147483648, %v1351_v27  ;;  %vm1356_vm0 = vcmp.eq.f32.partialorder %v1351_v27, 0.0 }
 0x6ce   : > { %v1702_v28 = vpop.eup %1701 }
 0x6cf   : > { %v1353_v29 = vmul.f32 %v1702_v28, %v1351_v27 }
 0x6d1   : > { %v1355_v31 = vsel %vm1354_vm15, %v1351_v27, %v1353_v29 }
 0x6d2   : > { %v1358_v3 = vsel %vm1356_vm0, %v1357_v30, %v1355_v31 }
 0x6d3   : > { %v1359_v32 = vmax.f32 %v1358_v3, 1e-15 }
 0x6d5   : > { %v1360_v33 = vmin.f32 %v1359_v32, 15.0 }
 0x6d7   : > { %v1361_v34 = vmul.f32 1.442695, %v1360_v33 }
 0x6d9   : > { %1703 = vpow2.f32 %v1361_v34 }
 0x6e3   : > { %v1704_v35 = vpop.eup %1703 }
 0x6e4   : > { %1705 = vrcp.f32 %v1704_v35 }
 0x6e5   : > { %1707 = vrcp.f32 %v1359_v32 }
 0x6ee   : > { %v1706_v60 = vpop.eup %1705 }
 0x6ef   : > { %v1365_v36 = vsub.f32 %v1704_v35, %v1706_v60  ;;  %v1708_v42 = vpop.eup %1707 }
 0x6f1   : > { %v1366_v37 = vmul.f32 0.5, %v1365_v36 }
 0x6f3   : > { %v1368_v47 = vmul.f32 %v1708_v42, %v1366_v37 }
 0x6f5   : > { %v1369_v48 = vmul.f32 %v1368_v47, %v1348_v63 }
 0x6f7   : > { %v1370_v50 = vmul.f32 %v1369_v48, %v1369_v48 }
 0x6f9   : > { %1371 = vadd.xlane.f32.xlu0 %v1370_v50 }
 0x786   : > { %v1372_v38 = vpop.xlane.xlu0 %1371 }
 0x787   : > { %v1373_v51 = vadd.f32 1.0, %v1372_v38 }
 0x789   : > { %1709 = vrsqrt.f32 %v1373_v51  ;;  %vm1376_vm1 = vcmp.eq.f32.partialorder %v1373_v51, inf  ;;  %v1379_v41 = vand.u32 2147483648, %v1373_v51  ;;  %vm1378_vm2 = vcmp.eq.f32.partialorder %v1373_v51, 0.0 }
 0x793   : > { %v1710_v56 = vpop.eup %1709 }
 0x794   : > { %v1375_v59 = vmul.f32 %v1710_v56, %v1373_v51 }
 0x796   : > { %v1377_v61 = vsel %vm1376_vm1, %v1373_v51, %v1375_v59 }
 0x797   : > { %v1380_v1 = vsel %vm1378_vm2, %v1379_v41, %v1377_v61 }
 0x798   : > { %v1381_v45 = vmax.f32 %v1380_v1, 1e-07 }
 0x79a   : > { %v1382_v46 = vadd.f32 1.0, %v1381_v45 }
 0x79c   : > { %1711 = vrcp.f32 %v1382_v46 }
 0x7a6   : > { %v1712_v40 = vpop.eup %1711 }
 0x7a7   : > { %v1384_v55 = vmul.f32 %v1712_v40, %v1369_v48 }
 0x7a9   : > { %v1541_v54 = vmul.f32 -1.442695, %v1384_v55 }
 0x7ab   : > { %1713 = vpow2.f32 %v1541_v54 }
 0x7b5   : > { %v1714_v49 = vpop.eup %1713 }
 0x7b6   : > { %v1388_v4 = vadd.f32 1.0, %v1714_v49 }
 0x7b8   : > { %1715 = vrcp.f32 %v1388_v4 }
 0x7c2   : > { %v1716_v5 = vpop.eup %1715 }
 0x7c3   : > { %v1391_v6 = vmul.f32 %v1716_v5, %v1384_v55 }
 0x7c5   : > { %v1392_v7 = vmul.f32 %v1391_v6, %v1391_v6  ;;  %v1399_v58 = vmul.f32 2.0, %v1391_v6 }
 0x7c7   : > { %1393 = vadd.xlane.f32.xlu1 %v1392_v7 }
 0x854   : > { %v1394_v57 = vpop.xlane.xlu1 %1393 }
 0x855   : > { %v1395_v39 = vsub.f32 1.0, %v1394_v57  ;;  %v1396_v52 = vadd.f32 1.0, %v1394_v57 }
 0x857   : > { %1717 = vrcp.f32 %v1395_v39 }
 0x861   : > { %v1718_v62 = vpop.eup %1717 }
 0x862   : > { %v1398_v43 = vmul.f32 %v1718_v62, %v1396_v52  ;;  %v1400_v44 = vmul.f32 %v1718_v62, %v1399_v58 }
 0x864   : > { %v1404_v53 = vsel %vm1401_vm3, %v1398_v43, %v1400_v44 }
 0x865   : > { %1405 = vst [vmem:[%s416_s18] sm:$0xff] %v1404_v53 }
 0x866 PF: > { %s22_s19 = sadd.s32 1, %s1725_s19  }
 0x867   : > { %p19_p4 = scmp.ge.s32.totalorder %s22_s19, 4  }
 0x869   :  { %21 = sbr.rel (!%p19_p4) target bundleno = 2 (0x2), region = 100 }

</bundles_post_ra>
